<compile_context>
chip_gen: v6e
topology: v6e:2x2x1
jax: 0.10.0
libtpu: 0.0.40
codegen_flags: <defaults>
</compile_context>

<pallas_src>
import functools

import jax
import jax.numpy as jnp
from jax.experimental import pallas as pl
from jax.experimental.pallas import tpu as pltpu

LANE = 128
ALIGN = 256
VMEM_LIMIT = 48 * 1024 * 1024


def _round_up(x, m):
    return (x + m - 1) // m * m


def _pick_blocks(n_pad, target=512):
    """Largest 256-multiple divisors of n_pad, with block_m capped so num_m >= 2."""
    def largest_divisor(limit):
        best, b = 256, 256
        while b <= min(limit, n_pad):
            if n_pad % b == 0:
                best = b
            b += 256
        return best

    block_k = largest_divisor(target)
    # Keep at least two row panels so both v7x TensorCores stay busy.
    block_m = largest_divisor(min(target, max(256, n_pad // 2)))
    return block_m, block_k


# ---------------------------------------------------------------------------
# Feature transform kernel:  HW = H @ W   (bf16 in, f32 acc, bf16 out; row-tiled)
# ---------------------------------------------------------------------------
def feature_transform_kernel(h_ref, w_ref, hw_ref):
    hw_ref[...] = jnp.dot(h_ref[...], w_ref[...],
                          preferred_element_type=jnp.float32).astype(hw_ref.dtype)


def feature_transform(h_bf16, w_bf16, *, block_m):
    n_pad, f_in = h_bf16.shape
    hidden = w_bf16.shape[1]
    num_m = n_pad // block_m
    return pl.pallas_call(
        feature_transform_kernel,
        out_shape=jax.ShapeDtypeStruct((n_pad, hidden), jnp.bfloat16),
        grid_spec=pltpu.PrefetchScalarGridSpec(
            num_scalar_prefetch=0,
            grid=(num_m,),
            in_specs=[
                pl.BlockSpec((block_m, f_in), lambda m: (m, 0)),   # H panel
                pl.BlockSpec((f_in, hidden), lambda m: (0, 0)),    # W (resident)
            ],
            out_specs=pl.BlockSpec((block_m, hidden), lambda m: (m, 0)),
        ),
        compiler_params=pltpu.CompilerParams(
            dimension_semantics=("parallel",),
            vmem_limit_bytes=VMEM_LIMIT,
        ),
    )(h_bf16, w_bf16)


# ---------------------------------------------------------------------------
# Aggregation kernel:  out = ReLU(A @ HW + b), tiled (M row-panel, K contraction)
# ---------------------------------------------------------------------------
def gcn_aggregate_kernel(a_ref, hw_ref, b_ref, out_ref, acc_ref):
    k = pl.program_id(1)

    @pl.when(k == 0)
    def _():
        acc_ref[...] = jnp.zeros_like(acc_ref)

    acc_ref[...] += jnp.dot(a_ref[...], hw_ref[...],
                            preferred_element_type=jnp.float32)

    @pl.when(k == pl.num_programs(1) - 1)
    def _():
        out_ref[...] = jnp.maximum(acc_ref[...] + b_ref[...], 0.0).astype(out_ref.dtype)


def gcn_layer(a_bf16, h_bf16, w_bf16, b_f32, *, block_m, block_k):
    n_pad = a_bf16.shape[0]
    hidden = w_bf16.shape[1]
    num_m = n_pad // block_m
    num_k = n_pad // block_k

    # Hoisted feature transform (O(N*F*hidden), tiny next to the N^2 aggregation).
    hw = feature_transform(h_bf16, w_bf16, block_m=block_m)

    flops = 2 * n_pad * n_pad * hidden
    bytes_accessed = (a_bf16.size * 2            # stream A once
                      + num_m * hw.size * 2      # HW re-streamed per row panel
                      + n_pad * hidden * 2       # bf16 output
                      + hidden * 4)              # bias

    return pl.pallas_call(
        gcn_aggregate_kernel,
        out_shape=jax.ShapeDtypeStruct((n_pad, hidden), jnp.bfloat16),
        grid_spec=pltpu.PrefetchScalarGridSpec(
            num_scalar_prefetch=0,
            grid=(num_m, num_k),
            in_specs=[
                pl.BlockSpec((block_m, block_k), lambda m, k: (m, k)),   # A panel
                pl.BlockSpec((block_k, hidden), lambda m, k: (k, 0)),    # HW panel
                pl.BlockSpec((1, hidden), lambda m, k: (0, 0)),          # bias
            ],
            out_specs=pl.BlockSpec((block_m, hidden), lambda m, k: (m, 0)),
            scratch_shapes=[pltpu.VMEM((block_m, hidden), jnp.float32)],
        ),
        compiler_params=pltpu.CompilerParams(
            dimension_semantics=("parallel", "arbitrary"),
            vmem_limit_bytes=VMEM_LIMIT,
        ),
        cost_estimate=pl.CostEstimate(flops=flops, transcendentals=0,
                                      bytes_accessed=bytes_accessed),
    )(a_bf16, hw, b_f32)


# ---------------------------------------------------------------------------
# Predictor + JK-cat kernel (row-tiled):  emb = [H1 | H2],  pred = MLP(emb)
# ---------------------------------------------------------------------------
def predictor_kernel(h1_ref, h2_ref, wp1_ref, bp1_ref, wp2_ref, bp2_ref,
                     pred_ref, emb_ref):
    hidden = h1_ref.shape[1]

    # JK 'cat': write both bf16 halves directly into the emb output tile, then reuse the
    # assembled (block, 2*hidden) tile as a single 256-deep MXU operand for Wp1.
    emb_ref[:, :hidden] = h1_ref[...]
    emb_ref[:, hidden:] = h2_ref[...]
    emb = emb_ref[...]

    p = jnp.dot(emb, wp1_ref[...], preferred_element_type=jnp.float32) + bp1_ref[...]
    p = jnp.maximum(p, 0.0).astype(jnp.bfloat16)
    # Lane-dense padded pred slab (n_tasks padded to 128; sliced in the wrapper).
    pred_ref[...] = (jnp.dot(p, wp2_ref[...], preferred_element_type=jnp.float32)
                     + bp2_ref[...])


# ---------------------------------------------------------------------------
# Wrapper
# ---------------------------------------------------------------------------
def simgcn_forward(a_norm, x, params, n_tasks, *, max_block=512):
    N, f_in = x.shape
    hidden = params["w1"].shape[1]
    ph = params["wp1"].shape[1]

    n_pad = _round_up(N, ALIGN)
    f_pad = _round_up(f_in, LANE)
    t_pad = _round_up(n_tasks, LANE)
    block_m, block_k = _pick_blocks(n_pad, target=max_block)

    # --- HBM-side padding / dtype casts (cheap XLA glue) ---
    a_p = jnp.zeros((n_pad, n_pad), jnp.bfloat16).at[:N, :N].set(a_norm.astype(jnp.bfloat16))
    x_p = jnp.zeros((n_pad, f_pad), jnp.bfloat16).at[:N, :f_in].set(x.astype(jnp.bfloat16))
    w1_p = jnp.zeros((f_pad, hidden), jnp.bfloat16).at[:f_in, :].set(
        params["w1"].astype(jnp.bfloat16))
    w2 = params["w2"].astype(jnp.bfloat16)
    b1 = params["b1"].astype(jnp.float32).reshape(1, hidden)
    b2 = params["b2"].astype(jnp.float32).reshape(1, hidden)

    # --- two GCN layers (hoisted feature transform + tiled aggregation) ---
    h1 = gcn_layer(a_p, x_p, w1_p, b1, block_m=block_m, block_k=block_k)
    h2 = gcn_layer(a_p, h1, w2, b2, block_m=block_m, block_k=block_k)

    # --- predictor weights: bf16 matmul operands, lane-dense padded output slab ---
    wp1 = params["wp1"].astype(jnp.bfloat16)                       # (2*hidden, ph)
    bp1 = params["bp1"].astype(jnp.float32).reshape(1, ph)
    wp2_p = jnp.zeros((ph, t_pad), jnp.bfloat16).at[:, :n_tasks].set(
        params["wp2"].astype(jnp.bfloat16))
    bp2_p = jnp.zeros((1, t_pad), jnp.float32).at[:, :n_tasks].set(
        params["bp2"].astype(jnp.float32).reshape(1, n_tasks))

    num_m = n_pad // block_m
    pred_pad, emb_pad = pl.pallas_call(
        predictor_kernel,
        out_shape=(jax.ShapeDtypeStruct((n_pad, t_pad), jnp.float32),
                   jax.ShapeDtypeStruct((n_pad, 2 * hidden), jnp.bfloat16)),
        grid_spec=pltpu.PrefetchScalarGridSpec(
            num_scalar_prefetch=0,
            grid=(num_m,),
            in_specs=[
                pl.BlockSpec((block_m, hidden), lambda m: (m, 0)),     # H1 panel
                pl.BlockSpec((block_m, hidden), lambda m: (m, 0)),     # H2 panel
                pl.BlockSpec((2 * hidden, ph), lambda m: (0, 0)),      # Wp1 (resident)
                pl.BlockSpec((1, ph), lambda m: (0, 0)),               # bp1
                pl.BlockSpec((ph, t_pad), lambda m: (0, 0)),           # Wp2 (padded)
                pl.BlockSpec((1, t_pad), lambda m: (0, 0)),            # bp2 (padded)
            ],
            out_specs=[pl.BlockSpec((block_m, t_pad), lambda m: (m, 0)),
                       pl.BlockSpec((block_m, 2 * hidden), lambda m: (m, 0))],
        ),
        compiler_params=pltpu.CompilerParams(
            dimension_semantics=("parallel",),
            vmem_limit_bytes=VMEM_LIMIT,
        ),
    )(h1, h2, wp1, bp1, wp2_p, bp2_p)

    # Cast emb back to f32 at the interface (kernel stores bf16; no information lost
    # since H1/H2 are bf16).
    return pred_pad[:N, :n_tasks], emb_pad[:N, :].astype(jnp.float32)


# ---------------------------------------------------------------------------
# Glue: edge_index -> dense symmetric-normalized adjacency (GCNConv gcn_norm)
# ---------------------------------------------------------------------------
def build_normalized_adjacency(edge_index, num_nodes):
    src = edge_index[0]
    dst = edge_index[1]
    a = jnp.zeros((num_nodes, num_nodes), jnp.float32)
    # message flows src -> dst: out[dst] += x[src]  =>  A[dst, src] = 1
    a = a.at[dst, src].set(1.0)                       # duplicate edges dedup to weight 1
    # add only *missing* self loops (matches add_remaining_self_loops; no diag==2)
    a = jnp.maximum(a, jnp.eye(num_nodes, dtype=jnp.float32))
    deg = jnp.sum(a, axis=1)
    dinv = jnp.where(deg > 0, 1.0 / jnp.sqrt(deg), 0.0)
    return a * dinv[:, None] * dinv[None, :]


def init_params(key, in_channels, hidden, predictor_hidden, n_tasks):
    ks = jax.random.split(key, 6)
    emb_dim = 2 * hidden  # num_layers = 2, jk='cat'

    def glorot(k, shape):
        lim = jnp.sqrt(6.0 / (shape[0] + shape[1]))
        return jax.random.uniform(k, shape, jnp.float32, -lim, lim)

    return {
        "w1": glorot(ks[0], (in_channels, hidden)),
        "b1": jnp.zeros((1, hidden), jnp.float32),
        "w2": glorot(ks[1], (hidden, hidden)),
        "b2": jnp.zeros((1, hidden), jnp.float32),
        "wp1": glorot(ks[2], (emb_dim, predictor_hidden)),
        "bp1": 0.01 * jax.random.normal(ks[3], (1, predictor_hidden), jnp.float32),
        "wp2": glorot(ks[4], (predictor_hidden, n_tasks)),
        "bp2": 0.01 * jax.random.normal(ks[5], (1, n_tasks), jnp.float32),
    }


if __name__ == "__main__":
    # SimGNNConfig defaults: hidden_channels=128, num_layers=2,
    # predictor_hidden_feats=128, n_tasks=1.  Small graph: N=400, in_channels=16.
    N, in_channels, hidden, predictor_hidden, n_tasks = 400, 16, 128, 128, 1

    key = jax.random.PRNGKey(0)
    kx, kp, ke = jax.random.split(key, 3)

    x = jax.random.normal(kx, (N, in_channels), jnp.float32)

    # undirected graph: ring + random chords, as edge_index [2, E]
    nxt = (jnp.arange(N) + 1) % N
    extra_src = jax.random.randint(ke, (2 * N,), 0, N)
    extra_dst = jnp.roll(extra_src, N // 3)
    src = jnp.concatenate([jnp.arange(N), nxt, extra_src])
    dst = jnp.concatenate([nxt, jnp.arange(N), extra_dst])
    edge_index = jnp.stack([jnp.concatenate([src, dst]),
                            jnp.concatenate([dst, src])], axis=0).astype(jnp.int32)

    a_norm = build_normalized_adjacency(edge_index, N)
    params = init_params(kp, in_channels, hidden, predictor_hidden, n_tasks)

    fwd = jax.jit(functools.partial(simgcn_forward, n_tasks=n_tasks))
    pred, emb = fwd(a_norm, x, params)
    jax.block_until_ready((pred, emb))

    assert pred.shape == (N, n_tasks)
    assert emb.shape == (N, 2 * hidden)
    assert bool(jnp.all(jnp.isfinite(pred))) and bool(jnp.all(jnp.isfinite(emb)))
    print("KERNEL_OK")
</pallas_src>

<mosaic_0001>
module attributes {stable_mosaic.version = 11 : i64} {
  func.func @feature_transform_kernel(%arg0: i32, %arg1: memref<256x128xbf16, #tpu.memory_space<vmem>>, %arg2: memref<128x128xbf16, #tpu.memory_space<vmem>>, %arg3: memref<256x128xbf16, #tpu.memory_space<vmem>>) attributes {dimension_semantics = [#tpu.dimension_semantics<parallel>], iteration_bounds = array<i64: 2>, scalar_prefetch = 0 : i64, scratch_operands = 0 : i64, tpu.core_type = #tpu.core_type<tc>, window_params = [{transform_indices = @transform_0, window_bounds = array<i64: 256, 128>}, {pipeline_mode = #tpu.pipeline_mode<synchronous>, transform_indices = @transform_1, window_bounds = array<i64: 128, 128>}, {transform_indices = @transform_2, window_bounds = array<i64: 256, 128>}]} {
    %c0 = arith.constant 0 : index
    %c0_0 = arith.constant 0 : index
    %0 = vector.load %arg1[%c0, %c0_0] : memref<256x128xbf16, #tpu.memory_space<vmem>>, vector<256x128xbf16>
    %c0_1 = arith.constant 0 : index
    %c0_2 = arith.constant 0 : index
    %1 = vector.load %arg2[%c0_1, %c0_2] : memref<128x128xbf16, #tpu.memory_space<vmem>>, vector<128x128xbf16>
    %cst = arith.constant dense<0.000000e+00> : vector<256x128xf32>
    %2 = tpu.matmul %0, %1, %cst {dimension_numbers = #tpu.dot_dimension_numbers<[1], [0], [0], [1], [0, 0, 1, 1], [], []>} : vector<256x128xbf16>, vector<128x128xbf16>, vector<256x128xf32> -> vector<256x128xf32>
    %3 = arith.truncf %2 : vector<256x128xf32> to vector<256x128xbf16>
    %c0_3 = arith.constant 0 : index
    %c0_4 = arith.constant 0 : index
    %4 = vector.load %arg3[%c0_3, %c0_4] : memref<256x128xbf16, #tpu.memory_space<vmem>>, vector<256x128xbf16>
    tpu.vector_store %arg3[%c0_3, %c0_4], %3 {strides = array<i32>} : memref<256x128xbf16, #tpu.memory_space<vmem>>, vector<256x128xbf16>,
    return
  }
  func.func @transform_0(%arg0: i32) -> (i32, i32) {
    %c0_i32 = arith.constant 0 : i32
    %c0_i32_0 = arith.constant 0 : i32
    return %arg0, %c0_i32 : i32, i32
  }
  func.func @transform_1(%arg0: i32) -> (i32, i32) {
    %c0_i32 = arith.constant 0 : i32
    %c0_i32_0 = arith.constant 0 : i32
    %c0_i32_1 = arith.constant 0 : i32
    return %c0_i32, %c0_i32_0 : i32, i32
  }
  func.func @transform_2(%arg0: i32) -> (i32, i32) {
    %c0_i32 = arith.constant 0 : i32
    %c0_i32_0 = arith.constant 0 : i32
    return %arg0, %c0_i32 : i32, i32
  }
}

module attributes {stable_mosaic.version = 11 : i64} {
  func.func @gcn_aggregate_kernel(%arg0: i32, %arg1: i32, %arg2: memref<256x512xbf16, #tpu.memory_space<vmem>>, %arg3: memref<512x128xbf16, #tpu.memory_space<vmem>>, %arg4: memref<1x128xf32, #tpu.memory_space<vmem>>, %arg5: memref<256x128xbf16, #tpu.memory_space<vmem>>, %arg6: memref<256x128xf32, #tpu.memory_space<vmem>>) attributes {dimension_semantics = [#tpu.dimension_semantics<parallel>, #tpu.dimension_semantics<arbitrary>], iteration_bounds = array<i64: 2, 1>, scalar_prefetch = 0 : i64, scratch_operands = 1 : i64, tpu.core_type = #tpu.core_type<tc>, window_params = [{transform_indices = @transform_0, window_bounds = array<i64: 256, 512>}, {transform_indices = @transform_1, window_bounds = array<i64: 512, 128>}, {pipeline_mode = #tpu.pipeline_mode<synchronous>, transform_indices = @transform_2, window_bounds = array<i64: 1, 128>}, {transform_indices = @transform_3, window_bounds = array<i64: 256, 128>}]} {
    %c0_i32 = arith.constant 0 : i32
    %0 = arith.cmpi eq, %arg1, %c0_i32 : i32
    %1 = arith.extui %0 : i1 to i32
    %c0_i32_0 = arith.constant 0 : i32
    %2 = arith.cmpi ne, %1, %c0_i32_0 : i32
    scf.if %2 {
      %cst_10 = arith.constant 0.000000e+00 : f32
      %12 = vector.broadcast %cst_10 : f32 to vector<256x128xf32>
      %c0_11 = arith.constant 0 : index
      %c0_12 = arith.constant 0 : index
      %13 = vector.load %arg6[%c0_11, %c0_12] : memref<256x128xf32, #tpu.memory_space<vmem>>, vector<256x128xf32>
      tpu.vector_store %arg6[%c0_11, %c0_12], %12 {strides = array<i32>} : memref<256x128xf32, #tpu.memory_space<vmem>>, vector<256x128xf32>,
    } else {
    }
    %c0 = arith.constant 0 : index
    %c0_1 = arith.constant 0 : index
    %3 = vector.load %arg6[%c0, %c0_1] : memref<256x128xf32, #tpu.memory_space<vmem>>, vector<256x128xf32>
    %c0_2 = arith.constant 0 : index
    %c0_3 = arith.constant 0 : index
    %4 = vector.load %arg2[%c0_2, %c0_3] : memref<256x512xbf16, #tpu.memory_space<vmem>>, vector<256x512xbf16>
    %c0_4 = arith.constant 0 : index
    %c0_5 = arith.constant 0 : index
    %5 = vector.load %arg3[%c0_4, %c0_5] : memref<512x128xbf16, #tpu.memory_space<vmem>>, vector<512x128xbf16>
    %cst = arith.constant dense<0.000000e+00> : vector<256x128xf32>
    %6 = tpu.matmul %4, %5, %cst {dimension_numbers = #tpu.dot_dimension_numbers<[1], [0], [0], [1], [0, 0, 1, 1], [], []>} : vector<256x512xbf16>, vector<512x128xbf16>, vector<256x128xf32> -> vector<256x128xf32>
    %7 = arith.addf %3, %6 : vector<256x128xf32>
    %c0_6 = arith.constant 0 : index
    %c0_7 = arith.constant 0 : index
    %8 = vector.load %arg6[%c0_6, %c0_7] : memref<256x128xf32, #tpu.memory_space<vmem>>, vector<256x128xf32>
    tpu.vector_store %arg6[%c0_6, %c0_7], %7 {strides = array<i32>} : memref<256x128xf32, #tpu.memory_space<vmem>>, vector<256x128xf32>,
    %c0_i32_8 = arith.constant 0 : i32
    %9 = arith.cmpi eq, %arg1, %c0_i32_8 : i32
    %10 = arith.extui %9 : i1 to i32
    %c0_i32_9 = arith.constant 0 : i32
    %11 = arith.cmpi ne, %10, %c0_i32_9 : i32
    scf.if %11 {
      %c0_10 = arith.constant 0 : index
      %c0_11 = arith.constant 0 : index
      %12 = vector.load %arg6[%c0_10, %c0_11] : memref<256x128xf32, #tpu.memory_space<vmem>>, vector<256x128xf32>
      %c0_12 = arith.constant 0 : index
      %c0_13 = arith.constant 0 : index
      %13 = vector.load %arg4[%c0_12, %c0_13] : memref<1x128xf32, #tpu.memory_space<vmem>>, vector<1x128xf32>
      %14 = vector.broadcast %13 : vector<1x128xf32> to vector<256x128xf32>
      %15 = arith.addf %12, %14 : vector<256x128xf32>
      %cst_14 = arith.constant 0.000000e+00 : f32
      %16 = vector.broadcast %cst_14 : f32 to vector<256x128xf32>
      %17 = arith.maximumf %15, %16 : vector<256x128xf32>
      %18 = arith.truncf %17 : vector<256x128xf32> to vector<256x128xbf16>
      %c0_15 = arith.constant 0 : index
      %c0_16 = arith.constant 0 : index
      %19 = vector.load %arg5[%c0_15, %c0_16] : memref<256x128xbf16, #tpu.memory_space<vmem>>, vector<256x128xbf16>
      tpu.vector_store %arg5[%c0_15, %c0_16], %18 {strides = array<i32>} : memref<256x128xbf16, #tpu.memory_space<vmem>>, vector<256x128xbf16>,
    } else {
    }
    return
  }
  func.func @transform_0(%arg0: i32, %arg1: i32) -> (i32, i32) {
    %c0_i32 = arith.constant 0 : i32
    return %arg0, %arg1 : i32, i32
  }
  func.func @transform_1(%arg0: i32, %arg1: i32) -> (i32, i32) {
    %c0_i32 = arith.constant 0 : i32
    %c0_i32_0 = arith.constant 0 : i32
    return %arg1, %c0_i32 : i32, i32
  }
  func.func @transform_2(%arg0: i32, %arg1: i32) -> (i32, i32) {
    %c0_i32 = arith.constant 0 : i32
    %c0_i32_0 = arith.constant 0 : i32
    %c0_i32_1 = arith.constant 0 : i32
    return %c0_i32, %c0_i32_0 : i32, i32
  }
  func.func @transform_3(%arg0: i32, %arg1: i32) -> (i32, i32) {
    %c0_i32 = arith.constant 0 : i32
    %c0_i32_0 = arith.constant 0 : i32
    return %arg0, %c0_i32 : i32, i32
  }
}

module attributes {stable_mosaic.version = 11 : i64} {
  func.func @predictor_kernel(%arg0: i32, %arg1: memref<256x128xbf16, #tpu.memory_space<vmem>>, %arg2: memref<256x128xbf16, #tpu.memory_space<vmem>>, %arg3: memref<256x128xbf16, #tpu.memory_space<vmem>>, %arg4: memref<1x128xf32, #tpu.memory_space<vmem>>, %arg5: memref<128x128xbf16, #tpu.memory_space<vmem>>, %arg6: memref<1x128xf32, #tpu.memory_space<vmem>>, %arg7: memref<256x128xf32, #tpu.memory_space<vmem>>, %arg8: memref<256x256xbf16, #tpu.memory_space<vmem>>) attributes {dimension_semantics = [#tpu.dimension_semantics<parallel>], iteration_bounds = array<i64: 2>, scalar_prefetch = 0 : i64, scratch_operands = 0 : i64, tpu.core_type = #tpu.core_type<tc>, window_params = [{transform_indices = @transform_0, window_bounds = array<i64: 256, 128>}, {transform_indices = @transform_1, window_bounds = array<i64: 256, 128>}, {pipeline_mode = #tpu.pipeline_mode<synchronous>, transform_indices = @transform_2, window_bounds = array<i64: 256, 128>}, {pipeline_mode = #tpu.pipeline_mode<synchronous>, transform_indices = @transform_3, window_bounds = array<i64: 1, 128>}, {pipeline_mode = #tpu.pipeline_mode<synchronous>, transform_indices = @transform_4, window_bounds = array<i64: 128, 128>}, {pipeline_mode = #tpu.pipeline_mode<synchronous>, transform_indices = @transform_5, window_bounds = array<i64: 1, 128>}, {transform_indices = @transform_6, window_bounds = array<i64: 256, 128>}, {transform_indices = @transform_7, window_bounds = array<i64: 256, 256>}]} {
    %c0 = arith.constant 0 : index
    %c0_0 = arith.constant 0 : index
    %0 = vector.load %arg1[%c0, %c0_0] : memref<256x128xbf16, #tpu.memory_space<vmem>>, vector<256x128xbf16>
    %c0_1 = arith.constant 0 : index
    %c0_2 = arith.constant 0 : index
    %1 = vector.load %arg8[%c0_1, %c0_2] : memref<256x256xbf16, #tpu.memory_space<vmem>>, vector<256x128xbf16>
    tpu.vector_store %arg8[%c0_1, %c0_2], %0 {strides = array<i32>} : memref<256x256xbf16, #tpu.memory_space<vmem>>, vector<256x128xbf16>,
    %c0_3 = arith.constant 0 : index
    %c0_4 = arith.constant 0 : index
    %2 = vector.load %arg2[%c0_3, %c0_4] : memref<256x128xbf16, #tpu.memory_space<vmem>>, vector<256x128xbf16>
    %c0_5 = arith.constant 0 : index
    %c128 = arith.constant 128 : index
    %3 = vector.load %arg8[%c0_5, %c128] : memref<256x256xbf16, #tpu.memory_space<vmem>>, vector<256x128xbf16>
    tpu.vector_store %arg8[%c0_5, %c128], %2 {strides = array<i32>} : memref<256x256xbf16, #tpu.memory_space<vmem>>, vector<256x128xbf16>,
    %c0_6 = arith.constant 0 : index
    %c0_7 = arith.constant 0 : index
    %4 = vector.load %arg8[%c0_6, %c0_7] : memref<256x256xbf16, #tpu.memory_space<vmem>>, vector<256x256xbf16>
    %c0_8 = arith.constant 0 : index
    %c0_9 = arith.constant 0 : index
    %5 = vector.load %arg3[%c0_8, %c0_9] : memref<256x128xbf16, #tpu.memory_space<vmem>>, vector<256x128xbf16>
    %cst = arith.constant dense<0.000000e+00> : vector<256x128xf32>
    %6 = tpu.matmul %4, %5, %cst {dimension_numbers = #tpu.dot_dimension_numbers<[1], [0], [0], [1], [0, 0, 1, 1], [], []>} : vector<256x256xbf16>, vector<256x128xbf16>, vector<256x128xf32> -> vector<256x128xf32>
    %c0_10 = arith.constant 0 : index
    %c0_11 = arith.constant 0 : index
    %7 = vector.load %arg4[%c0_10, %c0_11] : memref<1x128xf32, #tpu.memory_space<vmem>>, vector<1x128xf32>
    %8 = vector.broadcast %7 : vector<1x128xf32> to vector<256x128xf32>
    %9 = arith.addf %6, %8 : vector<256x128xf32>
    %cst_12 = arith.constant 0.000000e+00 : f32
    %10 = vector.broadcast %cst_12 : f32 to vector<256x128xf32>
    %11 = arith.maximumf %9, %10 : vector<256x128xf32>
    %12 = arith.truncf %11 : vector<256x128xf32> to vector<256x128xbf16>
    %c0_13 = arith.constant 0 : index
    %c0_14 = arith.constant 0 : index
    %13 = vector.load %arg5[%c0_13, %c0_14] : memref<128x128xbf16, #tpu.memory_space<vmem>>, vector<128x128xbf16>
    %cst_15 = arith.constant dense<0.000000e+00> : vector<256x128xf32>
    %14 = tpu.matmul %12, %13, %cst_15 {dimension_numbers = #tpu.dot_dimension_numbers<[1], [0], [0], [1], [0, 0, 1, 1], [], []>} : vector<256x128xbf16>, vector<128x128xbf16>, vector<256x128xf32> -> vector<256x128xf32>
    %c0_16 = arith.constant 0 : index
    %c0_17 = arith.constant 0 : index
    %15 = vector.load %arg6[%c0_16, %c0_17] : memref<1x128xf32, #tpu.memory_space<vmem>>, vector<1x128xf32>
    %16 = vector.broadcast %15 : vector<1x128xf32> to vector<256x128xf32>
    %17 = arith.addf %14, %16 : vector<256x128xf32>
    %c0_18 = arith.constant 0 : index
    %c0_19 = arith.constant 0 : index
    %18 = vector.load %arg7[%c0_18, %c0_19] : memref<256x128xf32, #tpu.memory_space<vmem>>, vector<256x128xf32>
    tpu.vector_store %arg7[%c0_18, %c0_19], %17 {strides = array<i32>} : memref<256x128xf32, #tpu.memory_space<vmem>>, vector<256x128xf32>,
    return
  }
  func.func @transform_0(%arg0: i32) -> (i32, i32) {
    %c0_i32 = arith.constant 0 : i32
    %c0_i32_0 = arith.constant 0 : i32
    return %arg0, %c0_i32 : i32, i32
  }
  func.func @transform_1(%arg0: i32) -> (i32, i32) {
    %c0_i32 = arith.constant 0 : i32
    %c0_i32_0 = arith.constant 0 : i32
    return %arg0, %c0_i32 : i32, i32
  }
  func.func @transform_2(%arg0: i32) -> (i32, i32) {
    %c0_i32 = arith.constant 0 : i32
    %c0_i32_0 = arith.constant 0 : i32
    %c0_i32_1 = arith.constant 0 : i32
    return %c0_i32, %c0_i32_0 : i32, i32
  }
  func.func @transform_3(%arg0: i32) -> (i32, i32) {
    %c0_i32 = arith.constant 0 : i32
    %c0_i32_0 = arith.constant 0 : i32
    %c0_i32_1 = arith.constant 0 : i32
    return %c0_i32, %c0_i32_0 : i32, i32
  }
  func.func @transform_4(%arg0: i32) -> (i32, i32) {
    %c0_i32 = arith.constant 0 : i32
    %c0_i32_0 = arith.constant 0 : i32
    %c0_i32_1 = arith.constant 0 : i32
    return %c0_i32, %c0_i32_0 : i32, i32
  }
  func.func @transform_5(%arg0: i32) -> (i32, i32) {
    %c0_i32 = arith.constant 0 : i32
    %c0_i32_0 = arith.constant 0 : i32
    %c0_i32_1 = arith.constant 0 : i32
    return %c0_i32, %c0_i32_0 : i32, i32
  }
  func.func @transform_6(%arg0: i32) -> (i32, i32) {
    %c0_i32 = arith.constant 0 : i32
    %c0_i32_0 = arith.constant 0 : i32
    return %arg0, %c0_i32 : i32, i32
  }
  func.func @transform_7(%arg0: i32) -> (i32, i32) {
    %c0_i32 = arith.constant 0 : i32
    %c0_i32_0 = arith.constant 0 : i32
    return %arg0, %c0_i32 : i32, i32
  }
}

</mosaic_0001>

<bundles_post_ra>
// kernel: simgcn_forward.5
= control target key start
LH: loop header
LB: loop body
LE: loop exit
PB: predicated region body
PF: predicated region fallthrough
CT: control target
= control target key end

     0   :  { %s1054_s9 = smov 0   ;;  %s1138_s0 = inlined_call_operand.vmem [shape: bf16[512,128], index: 0, kind: input, shape index: {}]   ;;  %s1139_s1 = inlined_call_operand.vmem [shape: bf16[128,128], index: 1, kind: input, shape index: {}]   ;;  %s1140_s2 = inlined_call_operand.vmem [shape: bf16[512,128], index: 2, kind: output, shape index: {}]  }
   0x1 LB: > { %s717_s10 = sadd.s32 4294967295, %s1037_s9   ;;  %p721_p0 = scmp.ge.s32.totalorder %s1037_s9, 1  ;;  %s1037_s9 = sphi %s1054_s9, %s12_s9  }
   0x2   : > { %p113_p1 = scmp.lt.s32.totalorder %s1037_s9, 3 }
   0x4   : > { %p114_p2 = pnand %p721_p0, %p113_p1 }
   0x5   : > { %s722_s13 = sshll.u32 (!%p114_p2), %s717_s10, 5 }
   0x6   : > { %117 = sbr.rel (%p114_p2) target bundleno = 270 (0x10e), region = 28  ;;  %p136_p3 = scmp.lt.s32.totalorder (!%p114_p2), %s722_s13, 63 }
   0xb   : > { %v1007_v0 = vld [vmem:[%s1139_s1 + $0x38] sm:$0xff]   ;;  %v1008_v1 = vld [vmem:[%s1139_s1 + $0x30] sm:$0xff]   ;;  %s1142_s13 = smov (!%p136_p3, %s722_s13), 63  ;;  %v1009_v2 = vld [vmem:[%s1139_s1 + $0x28] sm:$0xff]  }
   0xc   : > { %935 = vmatprep.subr.bf16.mxu0 %v1007_v0  ;;  %983 = vmatprep.subr.bf16.mxu1 %v1007_v0  ;;  %s723_s18 = sshll.u32 %s1142_s13, 2  ;;  %v1010_v3 = vld [vmem:[%s1139_s1 + $0x20] sm:$0xff]   ;;  %v1011_v6 = vld [vmem:[%s1139_s1 + $0x18] sm:$0xff]   ;;  %v1012_v7 = vld [vmem:[%s1139_s1 + $0x10] sm:$0xff]  }
   0xd   : > { %936 = vmatpush3.bf16.msra.mxu0 %v1007_v0  ;;  %991 = vmatpush3.bf16.msra.mxu1 %v1007_v0  ;;  %s1079_s21 = scalar_lea.vmem %s1138_s0, %s723_s18  ;;  %v1013_v8 = vld [vmem:[%s1139_s1 + $0x8] sm:$0xff]   ;;  %v1014_v9 = vld [vmem:[%s1139_s1] sm:$0xff]   ;;  %s1117_s6 = scalar_lea.vmem %s1140_s2, %s723_s18 }
   0xe   : > { %937 = vmatprep.subr.bf16.mxu0 %v1008_v1  ;;  %984 = vmatprep.subr.bf16.mxu1 %v1008_v1  ;;  %v1015_v4 = vld [vmem:[%s1079_s21] sm:$0xff]   ;;  %v1017_v10 = vld [vmem:[%s1079_s21 + $0x8] sm:$0xff]   ;;  %v1019_v12 = vld [vmem:[%s1079_s21 + $0x10] sm:$0xff]  }
   0xf   : > { %v1016_v5 = vld [vmem:[%s1079_s21 + $0x40] sm:$0xff]   ;;  %951 = vmatprep.mubr.bf16.mxu0 %v1015_v4  ;;  %v1018_v11 = vld [vmem:[%s1079_s21 + $0x48] sm:$0xff]   ;;  %v1020_v13 = vld [vmem:[%s1079_s21 + $0x50] sm:$0xff]  }
  0x10   : > { %967 = vmatprep.mubr.bf16.mxu1 %v1016_v5  ;;  %v1021_v14 = vld [vmem:[%s1079_s21 + $0x18] sm:$0xff]   ;;  %v1023_v16 = vld [vmem:[%s1079_s21 + $0x20] sm:$0xff]   ;;  %v1025_v18 = vld [vmem:[%s1079_s21 + $0x28] sm:$0xff]  }
  0x11   : > { %938 = vmatpush3.bf16.msra.mxu0 %v1008_v1  ;;  %992 = vmatpush3.bf16.msra.mxu1 %v1008_v1  ;;  %v1022_v15 = vld [vmem:[%s1079_s21 + $0x58] sm:$0xff]   ;;  %v1024_v17 = vld [vmem:[%s1079_s21 + $0x60] sm:$0xff]   ;;  %v1026_v19 = vld [vmem:[%s1079_s21 + $0x68] sm:$0xff]  }
  0x12   : > { %939 = vmatprep.subr.bf16.mxu0 %v1009_v2  ;;  %985 = vmatprep.subr.bf16.mxu1 %v1009_v2  ;;  %v1027_v20 = vld [vmem:[%s1079_s21 + $0x30] sm:$0xff]   ;;  %v1029_v22 = vld [vmem:[%s1079_s21 + $0x38] sm:$0xff]  }
  0x13   : > { %v1028_v21 = vld [vmem:[%s1079_s21 + $0x70] sm:$0xff]   ;;  %v1030_v23 = vld [vmem:[%s1079_s21 + $0x78] sm:$0xff]  }
  0x15   : > { %940 = vmatpush3.bf16.msra.mxu0 %v1009_v2  ;;  %993 = vmatpush3.bf16.msra.mxu1 %v1009_v2 }
  0x16   : > { %941 = vmatprep.subr.bf16.mxu0 %v1010_v3  ;;  %986 = vmatprep.subr.bf16.mxu1 %v1010_v3 }
  0x19   : > { %942 = vmatpush3.bf16.msra.mxu0 %v1010_v3  ;;  %994 = vmatpush3.bf16.msra.mxu1 %v1010_v3 }
  0x1a   : > { %943 = vmatprep.subr.bf16.mxu0 %v1011_v6  ;;  %987 = vmatprep.subr.bf16.mxu1 %v1011_v6 }
  0x1d   : > { %944 = vmatpush3.bf16.msra.mxu0 %v1011_v6  ;;  %995 = vmatpush3.bf16.msra.mxu1 %v1011_v6 }
  0x1e   : > { %945 = vmatprep.subr.bf16.mxu0 %v1012_v7  ;;  %988 = vmatprep.subr.bf16.mxu1 %v1012_v7 }
  0x21   : > { %946 = vmatpush3.bf16.msra.mxu0 %v1012_v7  ;;  %996 = vmatpush3.bf16.msra.mxu1 %v1012_v7 }
  0x22   : > { %947 = vmatprep.subr.bf16.mxu0 %v1013_v8  ;;  %989 = vmatprep.subr.bf16.mxu1 %v1013_v8 }
  0x25   : > { %948 = vmatpush3.bf16.msra.mxu0 %v1013_v8  ;;  %997 = vmatpush3.bf16.msra.mxu1 %v1013_v8 }
  0x26   : > { %949 = vmatprep.subr.bf16.mxu0 %v1014_v9  ;;  %990 = vmatprep.subr.bf16.mxu1 %v1014_v9 }
  0x29   : > { %950 = vmatpush3.bf16.msra.mxu0 %v1014_v9  ;;  %998 = vmatpush3.bf16.msra.mxu1 %v1014_v9 }
  0x2c   : > { %952 = vmatmul.mubr.bf16.vlgmr.msra.gmra.mxu0 %v1017_v10  ;;  %968 = vmatmul.mubr.bf16.vlgmr.msra.gmra.mxu1 %v1018_v11 }
  0x2d   : > { %955 = vmatprep.mubr.bf16.mxu0 %v1019_v12  ;;  %971 = vmatprep.mubr.bf16.mxu1 %v1020_v13 }
  0x34   : > { %956 = vmatmul.mubr.bf16.gmra.mxu0 %v1021_v14  ;;  %972 = vmatmul.mubr.bf16.gmra.mxu1 %v1022_v15 }
  0x35   : > { %959 = vmatprep.mubr.bf16.mxu0 %v1023_v16  ;;  %975 = vmatprep.mubr.bf16.mxu1 %v1024_v17 }
  0x3c   : > { %960 = vmatmul.mubr.bf16.gmra.mxu0 %v1025_v18  ;;  %976 = vmatmul.mubr.bf16.gmra.mxu1 %v1026_v19 }
  0x3d   : > { %963 = vmatprep.mubr.bf16.mxu0 %v1027_v20  ;;  %979 = vmatprep.mubr.bf16.mxu1 %v1028_v21 }
  0x44   : > { %964 = vmatmul.mubr.bf16.gmra.mxu0 %v1029_v22  ;;  %980 = vmatmul.mubr.bf16.gmra.mxu1 %v1030_v23 }
  0xec   : > { %v953_v24 = vpop.f32.mrf.mxu0  ;;  %v969_v25 = vpop.f32.mrf.mxu1 }
  0xee   : > { %v374_v26 = vpop.f32.mrf.mxu0  ;;  %v438_v27 = vpop.f32.mrf.mxu1 }
  0xf0   : > { %v954_v28 = vpop.f32.mrf.mxu0  ;;  %v970_v29 = vpop.f32.mrf.mxu1 }
  0xf1   : > { %v824_v30 = vpack.c.bf16 %v954_v28, %v953_v24  ;;  %v864_v31 = vpack.c.bf16 %v970_v29, %v969_v25 }
  0xf2   : > { %v377_v32 = vpop.f32.mrf.mxu0  ;;  %v441_v33 = vpop.f32.mrf.mxu1 }
  0xf3   : > { %896 = vst [vmem:[%s1117_s6 + $0x8] sm:$0xff] %v824_v30   ;;  %904 = vst [vmem:[%s1117_s6 + $0x48] sm:$0xff] %v864_v31   ;;  %v819_v34 = vpack.c.bf16 %v377_v32, %v374_v26  ;;  %v859_v35 = vpack.c.bf16 %v441_v33, %v438_v27 }
  0xf4   : > { %v957_v36 = vpop.f32.mrf.mxu0  ;;  %v973_v37 = vpop.f32.mrf.mxu1 }
  0xf5   : > { %820 = vst [vmem:[%s1117_s6] sm:$0xff] %v819_v34   ;;  %903 = vst [vmem:[%s1117_s6 + $0x40] sm:$0xff] %v859_v35  }
  0xf6   : > { %v390_v38 = vpop.f32.mrf.mxu0  ;;  %v454_v39 = vpop.f32.mrf.mxu1 }
  0xf8   : > { %v958_v40 = vpop.f32.mrf.mxu0  ;;  %v974_v41 = vpop.f32.mrf.mxu1 }
  0xf9   : > { %v834_v42 = vpack.c.bf16 %v958_v40, %v957_v36  ;;  %v874_v43 = vpack.c.bf16 %v974_v41, %v973_v37 }
  0xfa   : > { %v393_v44 = vpop.f32.mrf.mxu0  ;;  %v457_v45 = vpop.f32.mrf.mxu1 }
  0xfb   : > { %898 = vst [vmem:[%s1117_s6 + $0x18] sm:$0xff] %v834_v42   ;;  %906 = vst [vmem:[%s1117_s6 + $0x58] sm:$0xff] %v874_v43   ;;  %v829_v46 = vpack.c.bf16 %v393_v44, %v390_v38  ;;  %v869_v47 = vpack.c.bf16 %v457_v45, %v454_v39 }
  0xfc   : > { %v961_v48 = vpop.f32.mrf.mxu0  ;;  %v977_v49 = vpop.f32.mrf.mxu1 }
  0xfd   : > { %897 = vst [vmem:[%s1117_s6 + $0x10] sm:$0xff] %v829_v46   ;;  %905 = vst [vmem:[%s1117_s6 + $0x50] sm:$0xff] %v869_v47  }
  0xfe   : > { %v406_v50 = vpop.f32.mrf.mxu0  ;;  %v470_v51 = vpop.f32.mrf.mxu1 }
 0x100   : > { %v962_v52 = vpop.f32.mrf.mxu0  ;;  %v978_v53 = vpop.f32.mrf.mxu1 }
 0x101   : > { %v844_v54 = vpack.c.bf16 %v962_v52, %v961_v48  ;;  %v884_v55 = vpack.c.bf16 %v978_v53, %v977_v49 }
 0x102   : > { %v409_v56 = vpop.f32.mrf.mxu0  ;;  %v473_v57 = vpop.f32.mrf.mxu1 }
 0x103   : > { %900 = vst [vmem:[%s1117_s6 + $0x28] sm:$0xff] %v844_v54   ;;  %908 = vst [vmem:[%s1117_s6 + $0x68] sm:$0xff] %v884_v55   ;;  %v839_v58 = vpack.c.bf16 %v409_v56, %v406_v50  ;;  %v879_v59 = vpack.c.bf16 %v473_v57, %v470_v51 }
 0x104   : > { %v965_v60 = vpop.f32.mrf.mxu0  ;;  %v981_v61 = vpop.f32.mrf.mxu1 }
 0x105   : > { %899 = vst [vmem:[%s1117_s6 + $0x20] sm:$0xff] %v839_v58   ;;  %907 = vst [vmem:[%s1117_s6 + $0x60] sm:$0xff] %v879_v59  }
 0x106   : > { %v422_v62 = vpop.f32.mrf.mxu0  ;;  %v486_v63 = vpop.f32.mrf.mxu1 }
 0x108   : > { %v966_v0 = vpop.f32.mrf.mxu0  ;;  %v982_v1 = vpop.f32.mrf.mxu1 }
 0x109   : > { %v854_v2 = vpack.c.bf16 %v966_v0, %v965_v60  ;;  %v894_v3 = vpack.c.bf16 %v982_v1, %v981_v61 }
 0x10a   : > { %v425_v4 = vpop.f32.mrf.mxu0  ;;  %v489_v5 = vpop.f32.mrf.mxu1 }
 0x10b   : > { %902 = vst [vmem:[%s1117_s6 + $0x38] sm:$0xff] %v854_v2   ;;  %910 = vst [vmem:[%s1117_s6 + $0x78] sm:$0xff] %v894_v3   ;;  %v849_v6 = vpack.c.bf16 %v425_v4, %v422_v62  ;;  %v889_v7 = vpack.c.bf16 %v489_v5, %v486_v63 }
 0x10d   : > { %901 = vst [vmem:[%s1117_s6 + $0x30] sm:$0xff] %v849_v6   ;;  %909 = vst [vmem:[%s1117_s6 + $0x70] sm:$0xff] %v889_v7  }
 0x10e PF: > { %s12_s9 = sadd.s32 1, %s1037_s9  }
 0x10f   : > { %p9_p4 = scmp.ge.s32.totalorder %s12_s9, 4  }
 0x111   :  { %11 = sbr.rel (!%p9_p4) target bundleno = 1 (0x1), region = 58 }

// kernel: simgcn_forward.9
= control target key start
LH: loop header
LB: loop body
LE: loop exit
PB: predicated region body
PF: predicated region fallthrough
CT: control target
= control target key end

     0   :  { %s1756_s24 = smov 0   ;;  %s2151_s0 = inlined_call_operand.vmem [shape: bf16[512,128], index: 0, kind: input, shape index: {}]   ;;  %s2152_s1 = inlined_call_operand.vmem [shape: bf16[512,128], index: 1, kind: input, shape index: {}]   ;;  %s2153_s2 = inlined_call_operand.vmem [shape: bf16[256,128], index: 2, kind: input, shape index: {}]   ;;  %s2154_s3 = inlined_call_operand.vmem [shape: f32[1,128], index: 3, kind: input, shape index: {}]   ;;  %s2155_s4 = inlined_call_operand.vmem [shape: bf16[128,128], index: 4, kind: input, shape index: {}]   ;;  %s2156_s5 = inlined_call_operand.vmem [shape: f32[1,128], index: 5, kind: input, shape index: {}]   ;;  %s2157_s6 = inlined_call_operand.vmem [shape: f32[512,128], index: 6, kind: output, shape index: {0}]   ;;  %s2158_s7 = inlined_call_operand.vmem [shape: bf16[512,256], index: 7, kind: output, shape index: {1}]  }
   0x1 LB: > { %s1353_s25 = sadd.s32 4294967295, %s1714_s24   ;;  %p1357_p0 = scmp.ge.s32.totalorder %s1714_s24, 1  ;;  %s1714_s24 = sphi %s1756_s24, %s18_s24  }
   0x2   : > { %p252_p1 = scmp.lt.s32.totalorder %s1714_s24, 3 }
   0x4   : > { %p253_p2 = pnand %p1357_p0, %p252_p1 }
   0x5   : > { %s1358_s28 = sshll.u32 (!%p253_p2), %s1353_s25, 5 }
   0x6   : > { %256 = sbr.rel (%p253_p2) target bundleno = 557 (0x22d), region = 44  ;;  %p296_p3 = scmp.lt.s32.totalorder (!%p253_p2), %s1358_s28, 63 }
   0xb   : > { %v1636_v0 = vld [vmem:[%s2153_s2 + $0x78] sm:$0xff]   ;;  %v1638_v2 = vld [vmem:[%s2153_s2 + $0x70] sm:$0xff]   ;;  %v1640_v4 = vld [vmem:[%s2153_s2 + $0x68] sm:$0xff]   ;;  %s2160_s28 = smov (!%p296_p3, %s1358_s28), 63 }
   0xc   : > { %v1637_v1 = vld [vmem:[%s2153_s2 + $0x38] sm:$0xff]   ;;  %1428 = vmatprep.subr.bf16.mxu0 %v1636_v0  ;;  %1612 = vmatprep.subr.bf16.mxu1 %v1636_v0  ;;  %v1639_v3 = vld [vmem:[%s2153_s2 + $0x30] sm:$0xff]   ;;  %v1641_v5 = vld [vmem:[%s2153_s2 + $0x28] sm:$0xff]   ;;  %s1359_s18 = sshll.u32 %s2160_s28, 2  ;;  %s1363_s21 = sshll.u32 %s2160_s28, 3 }
   0xd   : > { %1429 = vmatpush3.bf16.msra.mxu0 %v1637_v1  ;;  %1620 = vmatpush3.bf16.msra.mxu1 %v1637_v1  ;;  %v1642_v6 = vld [vmem:[%s2153_s2 + $0x60] sm:$0xff]   ;;  %v1644_v8 = vld [vmem:[%s2153_s2 + $0x58] sm:$0xff]   ;;  %s1798_s27 = scalar_lea.vmem %s2151_s0, %s1359_s18  ;;  %s1803_s8 = scalar_lea.vmem %s2152_s1, %s1359_s18  ;;  %v1646_v10 = vld [vmem:[%s2153_s2 + $0x50] sm:$0xff]  }
   0xe   : > { %1430 = vmatprep.subr.bf16.mxu0 %v1638_v2  ;;  %1613 = vmatprep.subr.bf16.mxu1 %v1638_v2  ;;  %v1643_v7 = vld [vmem:[%s2153_s2 + $0x20] sm:$0xff]   ;;  %v1645_v9 = vld [vmem:[%s2153_s2 + $0x18] sm:$0xff]   ;;  %s1813_s13 = scalar_lea.vmem %s2158_s7, %s1363_s21  ;;  %v1647_v14 = vld [vmem:[%s2153_s2 + $0x10] sm:$0xff]   ;;  %s2082_s10 = scalar_lea.vmem %s2157_s6, %s1363_s21 }
   0xf   : > { %v321_v11 = vld [vmem:[%s1798_s27] sm:$0xf]  ;;  %v322_v12 = vld [vmem:[%s1798_s27 + $0x4] sm:$0xf]  ;;  %v323_v16 = vld [vmem:[%s1798_s27 + $0x8] sm:$0xf] }
  0x10   : > { %v385_v13 = vld [vmem:[%s1803_s8] sm:$0xf]  ;;  %353 = vst [vmem:[%s1813_s13] sm:$0xf] %v321_v11  ;;  %354 = vst [vmem:[%s1813_s13 + $0x8] sm:$0xf] %v322_v12  ;;  %v1648_v18 = vld [vmem:[%s2153_s2 + $0x48] sm:$0xff]  }
  0x11   : > { %1431 = vmatpush3.bf16.msra.mxu0 %v1639_v3  ;;  %1621 = vmatpush3.bf16.msra.mxu1 %v1639_v3  ;;  %v386_v15 = vld [vmem:[%s1803_s8 + $0x4] sm:$0xf]  ;;  %417 = vst [vmem:[%s1813_s13 + $0x4] sm:$0xf] %v385_v13  ;;  %v324_v17 = vld [vmem:[%s1798_s27 + $0xc] sm:$0xf] }
  0x12   : > { %1432 = vmatprep.subr.bf16.mxu0 %v1640_v4  ;;  %1614 = vmatprep.subr.bf16.mxu1 %v1640_v4  ;;  %418 = vst [vmem:[%s1813_s13 + $0xc] sm:$0xf] %v386_v15  ;;  %355 = vst [vmem:[%s1813_s13 + $0x10] sm:$0xf] %v323_v16  ;;  %v387_v19 = vld [vmem:[%s1803_s8 + $0x8] sm:$0xf] }
  0x13   : > { %356 = vst [vmem:[%s1813_s13 + $0x18] sm:$0xf] %v324_v17  ;;  %v388_v20 = vld [vmem:[%s1803_s8 + $0xc] sm:$0xf]  ;;  %v325_v21 = vld [vmem:[%s1798_s27 + $0x10] sm:$0xf] }
  0x14   : > { %419 = vst [vmem:[%s1813_s13 + $0x14] sm:$0xf] %v387_v19  ;;  %420 = vst [vmem:[%s1813_s13 + $0x1c] sm:$0xf] %v388_v20  ;;  %v326_v22 = vld [vmem:[%s1798_s27 + $0x14] sm:$0xf] }
  0x15   : > { %1433 = vmatpush3.bf16.msra.mxu0 %v1641_v5  ;;  %1622 = vmatpush3.bf16.msra.mxu1 %v1641_v5  ;;  %357 = vst [vmem:[%s1813_s13 + $0x20] sm:$0xf] %v325_v21  ;;  %v389_v23 = vld [vmem:[%s1803_s8 + $0x10] sm:$0xf]  ;;  %v390_v24 = vld [vmem:[%s1803_s8 + $0x14] sm:$0xf] }
  0x16   : > { %1434 = vmatprep.subr.bf16.mxu0 %v1642_v6  ;;  %1615 = vmatprep.subr.bf16.mxu1 %v1642_v6  ;;  %358 = vst [vmem:[%s1813_s13 + $0x28] sm:$0xf] %v326_v22  ;;  %421 = vst [vmem:[%s1813_s13 + $0x24] sm:$0xf] %v389_v23  ;;  %v327_v25 = vld [vmem:[%s1798_s27 + $0x18] sm:$0xf] }
  0x17   : > { %422 = vst [vmem:[%s1813_s13 + $0x2c] sm:$0xf] %v390_v24  ;;  %v328_v26 = vld [vmem:[%s1798_s27 + $0x1c] sm:$0xf]  ;;  %v391_v27 = vld [vmem:[%s1803_s8 + $0x18] sm:$0xf] }
  0x18   : > { %v1649_v28 = vld [vmem:[%s2153_s2 + $0x8] sm:$0xff]   ;;  %359 = vst [vmem:[%s1813_s13 + $0x30] sm:$0xf] %v327_v25  ;;  %360 = vst [vmem:[%s1813_s13 + $0x38] sm:$0xf] %v328_v26  ;;  %v1650_v32 = vld [vmem:[%s2153_s2 + $0x40] sm:$0xff]  }
  0x19   : > { %1435 = vmatpush3.bf16.msra.mxu0 %v1643_v7  ;;  %1623 = vmatpush3.bf16.msra.mxu1 %v1643_v7  ;;  %v392_v29 = vld [vmem:[%s1803_s8 + $0x1c] sm:$0xf]  ;;  %423 = vst [vmem:[%s1813_s13 + $0x34] sm:$0xf] %v391_v27  ;;  %v329_v30 = vld [vmem:[%s1798_s27 + $0x20] sm:$0xf] }
  0x1a   : > { %1436 = vmatprep.subr.bf16.mxu0 %v1644_v8  ;;  %1616 = vmatprep.subr.bf16.mxu1 %v1644_v8  ;;  %v330_v31 = vld [vmem:[%s1798_s27 + $0x24] sm:$0xf]  ;;  %424 = vst [vmem:[%s1813_s13 + $0x3c] sm:$0xf] %v392_v29  ;;  %361 = vst [vmem:[%s1813_s13 + $0x40] sm:$0xf] %v329_v30 }
  0x1b   : > { %362 = vst [vmem:[%s1813_s13 + $0x48] sm:$0xf] %v330_v31  ;;  %v393_v33 = vld [vmem:[%s1803_s8 + $0x20] sm:$0xf]  ;;  %v394_v34 = vld [vmem:[%s1803_s8 + $0x24] sm:$0xf] }
  0x1c   : > { %v331_v35 = vld [vmem:[%s1798_s27 + $0x28] sm:$0xf]  ;;  %425 = vst [vmem:[%s1813_s13 + $0x44] sm:$0xf] %v393_v33  ;;  %426 = vst [vmem:[%s1813_s13 + $0x4c] sm:$0xf] %v394_v34 }
  0x1d   : > { %1437 = vmatpush3.bf16.msra.mxu0 %v1645_v9  ;;  %1624 = vmatpush3.bf16.msra.mxu1 %v1645_v9  ;;  %v332_v36 = vld [vmem:[%s1798_s27 + $0x2c] sm:$0xf]  ;;  %363 = vst [vmem:[%s1813_s13 + $0x50] sm:$0xf] %v331_v35  ;;  %v395_v37 = vld [vmem:[%s1803_s8 + $0x28] sm:$0xf] }
  0x1e   : > { %1438 = vmatprep.subr.bf16.mxu0 %v1646_v10  ;;  %1617 = vmatprep.subr.bf16.mxu1 %v1646_v10  ;;  %v396_v38 = vld [vmem:[%s1803_s8 + $0x2c] sm:$0xf]  ;;  %364 = vst [vmem:[%s1813_s13 + $0x58] sm:$0xf] %v332_v36  ;;  %427 = vst [vmem:[%s1813_s13 + $0x54] sm:$0xf] %v395_v37 }
  0x1f   : > { %428 = vst [vmem:[%s1813_s13 + $0x5c] sm:$0xf] %v396_v38  ;;  %v333_v39 = vld [vmem:[%s1798_s27 + $0x30] sm:$0xf]  ;;  %v334_v40 = vld [vmem:[%s1798_s27 + $0x34] sm:$0xf] }
  0x20   : > { %v1654_v41 = vld [vmem:[%s1813_s13 + $0x4] ss:$8 sps:$4 sm:$0xff]   ;;  %365 = vst [vmem:[%s1813_s13 + $0x60] sm:$0xf] %v333_v39  ;;  %366 = vst [vmem:[%s1813_s13 + $0x68] sm:$0xf] %v334_v40 }
  0x21   : > { %1439 = vmatpush3.bf16.msra.mxu0 %v1647_v14  ;;  %1625 = vmatpush3.bf16.msra.mxu1 %v1647_v14  ;;  %v1651_v42 = vld [vmem:[%s2153_s2] sm:$0xff]   ;;  %v1655_v44 = vld [vmem:[%s1813_s13 + $0x14] ss:$8 sps:$4 sm:$0xff]   ;;  %v397_v45 = vld [vmem:[%s1803_s8 + $0x30] sm:$0xf] }
  0x22   : > { %1440 = vmatprep.subr.bf16.mxu0 %v1648_v18  ;;  %1618 = vmatprep.subr.bf16.mxu1 %v1648_v18  ;;  %v1652_v43 = vld [vmem:[%s1813_s13] ss:$8 sps:$4 sm:$0xff]   ;;  %v398_v46 = vld [vmem:[%s1803_s8 + $0x34] sm:$0xf]  ;;  %429 = vst [vmem:[%s1813_s13 + $0x64] sm:$0xf] %v397_v45 }
  0x23   : > { %808 = vmatprep.mubr.bf16.mxu0 %v1654_v41  ;;  %v335_v47 = vld [vmem:[%s1798_s27 + $0x38] sm:$0xf]  ;;  %v336_v48 = vld [vmem:[%s1798_s27 + $0x3c] sm:$0xf]  ;;  %430 = vst [vmem:[%s1813_s13 + $0x6c] sm:$0xf] %v398_v46 }
  0x24   : > { %367 = vst [vmem:[%s1813_s13 + $0x70] sm:$0xf] %v335_v47  ;;  %368 = vst [vmem:[%s1813_s13 + $0x78] sm:$0xf] %v336_v48  ;;  %v399_v49 = vld [vmem:[%s1803_s8 + $0x38] sm:$0xf] }
  0x25   : > { %1441 = vmatpush3.bf16.msra.mxu0 %v1649_v28  ;;  %1626 = vmatpush3.bf16.msra.mxu1 %v1649_v28  ;;  %v400_v50 = vld [vmem:[%s1803_s8 + $0x3c] sm:$0xf]  ;;  %v337_v51 = vld [vmem:[%s1798_s27 + $0x40] sm:$0xf]  ;;  %431 = vst [vmem:[%s1813_s13 + $0x74] sm:$0xf] %v399_v49 }
  0x26   : > { %1442 = vmatprep.subr.bf16.mxu0 %v1650_v32  ;;  %1619 = vmatprep.subr.bf16.mxu1 %v1650_v32  ;;  %432 = vst [vmem:[%s1813_s13 + $0x7c] sm:$0xf] %v400_v50  ;;  %v338_v52 = vld [vmem:[%s1798_s27 + $0x44] sm:$0xf]  ;;  %369 = vst [vmem:[%s1813_s13 + $0x80] sm:$0xf] %v337_v51 }
  0x27   : > { %v401_v53 = vld [vmem:[%s1803_s8 + $0x40] sm:$0xf]  ;;  %v402_v54 = vld [vmem:[%s1803_s8 + $0x44] sm:$0xf]  ;;  %v1657_v55 = vld [vmem:[%s1813_s13 + $0x10] ss:$8 sps:$4 sm:$0xff]  }
  0x28   : > { %370 = vst [vmem:[%s1813_s13 + $0x88] sm:$0xf] %v338_v52  ;;  %433 = vst [vmem:[%s1813_s13 + $0x84] sm:$0xf] %v401_v53  ;;  %v339_v56 = vld [vmem:[%s1798_s27 + $0x48] sm:$0xf] }
  0x29   : > { %1443 = vmatpush3.bf16.msra.mxu0 %v1651_v42  ;;  %1627 = vmatpush3.bf16.msra.mxu1 %v1651_v42  ;;  %434 = vst [vmem:[%s1813_s13 + $0x8c] sm:$0xf] %v402_v54  ;;  %v340_v57 = vld [vmem:[%s1798_s27 + $0x4c] sm:$0xf]  ;;  %v403_v58 = vld [vmem:[%s1803_s8 + $0x48] sm:$0xf] }
  0x2a   : > { %v1658_v59 = vld [vmem:[%s1813_s13 + $0x24] ss:$8 sps:$4 sm:$0xff]   ;;  %371 = vst [vmem:[%s1813_s13 + $0x90] sm:$0xf] %v339_v56  ;;  %372 = vst [vmem:[%s1813_s13 + $0x98] sm:$0xf] %v340_v57 }
  0x2b   : > { %v404_v60 = vld [vmem:[%s1803_s8 + $0x4c] sm:$0xf]  ;;  %435 = vst [vmem:[%s1813_s13 + $0x94] sm:$0xf] %v403_v58  ;;  %v345_v61 = vld [vmem:[%s1798_s27 + $0x60] sm:$0xf] }
  0x2c   : > { %809 = vmatmul.mubr.bf16.vlgmr.msra.gmra.mxu0 %v1652_v43  ;;  %v346_v62 = vld [vmem:[%s1798_s27 + $0x64] sm:$0xf]  ;;  %436 = vst [vmem:[%s1813_s13 + $0x9c] sm:$0xf] %v404_v60  ;;  %377 = vst [vmem:[%s1813_s13 + $0xc0] sm:$0xf] %v345_v61 }
  0x2d   : > { %816 = vmatprep.mubr.bf16.mxu0 %v1655_v44  ;;  %378 = vst [vmem:[%s1813_s13 + $0xc8] sm:$0xf] %v346_v62  ;;  %v409_v63 = vld [vmem:[%s1803_s8 + $0x60] sm:$0xf]  ;;  %v410_v0 = vld [vmem:[%s1803_s8 + $0x64] sm:$0xf] }
  0x2e   : > { %v341_v1 = vld [vmem:[%s1798_s27 + $0x50] sm:$0xf]  ;;  %441 = vst [vmem:[%s1813_s13 + $0xc4] sm:$0xf] %v409_v63  ;;  %442 = vst [vmem:[%s1813_s13 + $0xcc] sm:$0xf] %v410_v0 }
  0x2f   : > { %v342_v2 = vld [vmem:[%s1798_s27 + $0x54] sm:$0xf]  ;;  %373 = vst [vmem:[%s1813_s13 + $0xa0] sm:$0xf] %v341_v1  ;;  %v405_v3 = vld [vmem:[%s1803_s8 + $0x50] sm:$0xf] }
  0x30   : > { %v406_v4 = vld [vmem:[%s1803_s8 + $0x54] sm:$0xf]  ;;  %374 = vst [vmem:[%s1813_s13 + $0xa8] sm:$0xf] %v342_v2  ;;  %437 = vst [vmem:[%s1813_s13 + $0xa4] sm:$0xf] %v405_v3 }
  0x31   : > { %438 = vst [vmem:[%s1813_s13 + $0xac] sm:$0xf] %v406_v4  ;;  %v347_v5 = vld [vmem:[%s1798_s27 + $0x68] sm:$0xf]  ;;  %v348_v6 = vld [vmem:[%s1798_s27 + $0x6c] sm:$0xf] }
  0x32   : > { %379 = vst [vmem:[%s1813_s13 + $0xd0] sm:$0xf] %v347_v5  ;;  %380 = vst [vmem:[%s1813_s13 + $0xd8] sm:$0xf] %v348_v6  ;;  %v1660_v7 = vld [vmem:[%s1813_s13 + $0x20] ss:$8 sps:$4 sm:$0xff]  }
  0x33   : > { %v1661_v8 = vld [vmem:[%s1813_s13 + $0x34] ss:$8 sps:$4 sm:$0xff]   ;;  %v411_v11 = vld [vmem:[%s1803_s8 + $0x68] sm:$0xf]  ;;  %v412_v12 = vld [vmem:[%s1803_s8 + $0x6c] sm:$0xf] }
  0x34   : > { %817 = vmatmul.mubr.bf16.gmra.mxu0 %v1657_v55  ;;  %v1682_v9 = vld [vmem:[%s1813_s13 + $0xc0] ss:$8 sps:$4 sm:$0xff]   ;;  %443 = vst [vmem:[%s1813_s13 + $0xd4] sm:$0xf] %v411_v11  ;;  %v343_v13 = vld [vmem:[%s1798_s27 + $0x58] sm:$0xf] }
  0x35   : > { %824 = vmatprep.mubr.bf16.mxu0 %v1658_v59  ;;  %v1684_v10 = vld [vmem:[%s1813_s13 + $0xc4] ss:$8 sps:$4 sm:$0xff]   ;;  %v344_v14 = vld [vmem:[%s1798_s27 + $0x5c] sm:$0xf]  ;;  %444 = vst [vmem:[%s1813_s13 + $0xdc] sm:$0xf] %v412_v12 }
  0x36   : > { %904 = vmatprep.mubr.bf16.mxu1 %v1684_v10  ;;  %375 = vst [vmem:[%s1813_s13 + $0xb0] sm:$0xf] %v343_v13  ;;  %376 = vst [vmem:[%s1813_s13 + $0xb8] sm:$0xf] %v344_v14  ;;  %v407_v15 = vld [vmem:[%s1803_s8 + $0x58] sm:$0xf] }
  0x37   : > { %905 = vmatmul.mubr.bf16.vlgmr.msra.gmra.mxu1 %v1682_v9  ;;  %v408_v16 = vld [vmem:[%s1803_s8 + $0x5c] sm:$0xf]  ;;  %v349_v17 = vld [vmem:[%s1798_s27 + $0x70] sm:$0xf]  ;;  %439 = vst [vmem:[%s1813_s13 + $0xb4] sm:$0xf] %v407_v15 }
  0x38   : > { %440 = vst [vmem:[%s1813_s13 + $0xbc] sm:$0xf] %v408_v16  ;;  %v350_v18 = vld [vmem:[%s1798_s27 + $0x74] sm:$0xf]  ;;  %381 = vst [vmem:[%s1813_s13 + $0xe0] sm:$0xf] %v349_v17 }
  0x39   : > { %v413_v19 = vld [vmem:[%s1803_s8 + $0x70] sm:$0xf]  ;;  %v414_v20 = vld [vmem:[%s1803_s8 + $0x74] sm:$0xf]  ;;  %382 = vst [vmem:[%s1813_s13 + $0xe8] sm:$0xf] %v350_v18 }
  0x3a   : > { %v1663_v21 = vld [vmem:[%s1813_s13 + $0x30] ss:$8 sps:$4 sm:$0xff]   ;;  %445 = vst [vmem:[%s1813_s13 + $0xe4] sm:$0xf] %v413_v19  ;;  %446 = vst [vmem:[%s1813_s13 + $0xec] sm:$0xf] %v414_v20 }
  0x3b   : > { %v351_v22 = vld [vmem:[%s1798_s27 + $0x78] sm:$0xf]  ;;  %v352_v23 = vld [vmem:[%s1798_s27 + $0x7c] sm:$0xf]  ;;  %v1664_v25 = vld [vmem:[%s1813_s13 + $0x44] ss:$8 sps:$4 sm:$0xff]  }
  0x3c   : > { %825 = vmatmul.mubr.bf16.gmra.mxu0 %v1660_v7  ;;  %v415_v24 = vld [vmem:[%s1803_s8 + $0x78] sm:$0xf]  ;;  %383 = vst [vmem:[%s1813_s13 + $0xf0] sm:$0xf] %v351_v22  ;;  %384 = vst [vmem:[%s1813_s13 + $0xf8] sm:$0xf] %v352_v23 }
  0x3d   : > { %832 = vmatprep.mubr.bf16.mxu0 %v1661_v8  ;;  %v416_v26 = vld [vmem:[%s1803_s8 + $0x7c] sm:$0xf]  ;;  %447 = vst [vmem:[%s1813_s13 + $0xf4] sm:$0xf] %v415_v24  ;;  %v1701_v28 = vld [vmem:[%s2155_s4 + $0x30] sm:$0xff]   ;;  %v1702_v31 = vld [vmem:[%s2155_s4 + $0x28] sm:$0xff]  }
  0x3e   : > { %448 = vst [vmem:[%s1813_s13 + $0xfc] sm:$0xf] %v416_v26  ;;  %v1700_v27 = vld [vmem:[%s2155_s4 + $0x38] sm:$0xff]   ;;  %v1666_v33 = vld [vmem:[%s1813_s13 + $0x40] ss:$8 sps:$4 sm:$0xff]   ;;  %v1705_v50 = vld [vmem:[%s2155_s4 + $0x10] sm:$0xff]  }
  0x3f   : > { %1564 = vmatprep.subr.bf16.mxu1 %v1700_v27  ;;  %v1688_v29 = vld [vmem:[%s1813_s13 + $0xd4] ss:$8 sps:$4 sm:$0xff]   ;;  %v1690_v30 = vld [vmem:[%s1813_s13 + $0xd0] ss:$8 sps:$4 sm:$0xff]   ;;  %v1670_v38 = vld [vmem:[%s1813_s13 + $0x64] ss:$8 sps:$4 sm:$0xff]  }
  0x40   : > { %1565 = vmatpush3.bf16.msra.mxu1 %v1700_v27  ;;  %912 = vmatprep.mubr.bf16.mxu1 %v1688_v29  ;;  %v1667_v34 = vld [vmem:[%s1813_s13 + $0x54] ss:$8 sps:$4 sm:$0xff]   ;;  %v1696_v35 = vld [vmem:[%s1813_s13 + $0xe0] ss:$8 sps:$4 sm:$0xff]   ;;  %v1669_v37 = vld [vmem:[%s1813_s13 + $0x50] ss:$8 sps:$4 sm:$0xff]  }
  0x41   : > { %1566 = vmatprep.subr.bf16.mxu1 %v1701_v28  ;;  %913 = vmatmul.mubr.bf16.gmra.mxu1 %v1690_v30  ;;  %v1694_v32 = vld [vmem:[%s1813_s13 + $0xe4] ss:$8 sps:$4 sm:$0xff]   ;;  %v1672_v40 = vld [vmem:[%s1813_s13 + $0x60] ss:$8 sps:$4 sm:$0xff]   ;;  %v1673_v41 = vld [vmem:[%s1813_s13 + $0x74] ss:$8 sps:$4 sm:$0xff]  }
  0x42   : > { %920 = vmatprep.mubr.bf16.mxu1 %v1694_v32  ;;  %v1675_v42 = vld [vmem:[%s1813_s13 + $0x70] ss:$8 sps:$4 sm:$0xff]   ;;  %v1676_v43 = vld [vmem:[%s1813_s13 + $0x84] ss:$8 sps:$4 sm:$0xff]   ;;  %v1678_v44 = vld [vmem:[%s1813_s13 + $0x80] ss:$8 sps:$4 sm:$0xff]  }
  0x43   : > { %v1699_v39 = vld [vmem:[%s1813_s13 + $0xf0] ss:$8 sps:$4 sm:$0xff]   ;;  %v1679_v45 = vld [vmem:[%s1813_s13 + $0x94] ss:$8 sps:$4 sm:$0xff]   ;;  %v1703_v46 = vld [vmem:[%s2155_s4 + $0x20] sm:$0xff]  }
  0x44   : > { %833 = vmatmul.mubr.bf16.gmra.mxu0 %v1663_v21  ;;  %1567 = vmatpush3.bf16.msra.mxu1 %v1701_v28  ;;  %v1681_v47 = vld [vmem:[%s1813_s13 + $0x90] ss:$8 sps:$4 sm:$0xff]   ;;  %v1685_v48 = vld [vmem:[%s1813_s13 + $0xa4] ss:$8 sps:$4 sm:$0xff]   ;;  %v1687_v51 = vld [vmem:[%s1813_s13 + $0xa0] ss:$8 sps:$4 sm:$0xff]  }
  0x45   : > { %840 = vmatprep.mubr.bf16.mxu0 %v1664_v25  ;;  %1568 = vmatprep.subr.bf16.mxu1 %v1702_v31  ;;  %v1697_v36 = vld [vmem:[%s1813_s13 + $0xf4] ss:$8 sps:$4 sm:$0xff]   ;;  %v1706_v53 = vld [vmem:[%s2155_s4 + $0x8] sm:$0xff]   ;;  %v1707_v54 = vld [vmem:[%s2155_s4] sm:$0xff]  }
  0x46   : > { %v1704_v49 = vld [vmem:[%s2155_s4 + $0x18] sm:$0xff]   ;;  %v2020_v59 = vld [vmem:[%s2154_s3] ss:$0 sm:$0xff] }
  0x47   : > { %v1691_v52 = vld [vmem:[%s1813_s13 + $0xb4] ss:$8 sps:$4 sm:$0xff]   ;;  %v1693_v55 = vld [vmem:[%s1813_s13 + $0xb0] ss:$8 sps:$4 sm:$0xff]  }
  0x48   : > { %1569 = vmatpush3.bf16.msra.mxu1 %v1702_v31 }
  0x49   : > { %921 = vmatmul.mubr.bf16.gmra.mxu1 %v1696_v35  ;;  %1570 = vmatprep.subr.bf16.mxu1 %v1703_v46 }
  0x4a   : > { %928 = vmatprep.mubr.bf16.mxu1 %v1697_v36 }
  0x4c   : > { %841 = vmatmul.mubr.bf16.gmra.mxu0 %v1666_v33  ;;  %1571 = vmatpush3.bf16.msra.mxu1 %v1703_v46 }
  0x4d   : > { %848 = vmatprep.mubr.bf16.mxu0 %v1667_v34  ;;  %1572 = vmatprep.subr.bf16.mxu1 %v1704_v49 }
  0x50   : > { %1573 = vmatpush3.bf16.msra.mxu1 %v1704_v49 }
  0x51   : > { %929 = vmatmul.mubr.bf16.gmra.mxu1 %v1699_v39  ;;  %1574 = vmatprep.subr.bf16.mxu1 %v1705_v50 }
  0x54   : > { %849 = vmatmul.mubr.bf16.gmra.mxu0 %v1669_v37  ;;  %1575 = vmatpush3.bf16.msra.mxu1 %v1705_v50 }
  0x55   : > { %856 = vmatprep.mubr.bf16.mxu0 %v1670_v38  ;;  %1576 = vmatprep.subr.bf16.mxu1 %v1706_v53 }
  0x58   : > { %1577 = vmatpush3.bf16.msra.mxu1 %v1706_v53 }
  0x59   : > { %1578 = vmatprep.subr.bf16.mxu1 %v1707_v54 }
  0x5c   : > { %857 = vmatmul.mubr.bf16.gmra.mxu0 %v1672_v40  ;;  %1579 = vmatpush3.bf16.msra.mxu1 %v1707_v54 }
  0x5d   : > { %864 = vmatprep.mubr.bf16.mxu0 %v1673_v41 }
  0x64   : > { %865 = vmatmul.mubr.bf16.gmra.mxu0 %v1675_v42 }
  0x65   : > { %872 = vmatprep.mubr.bf16.mxu0 %v1676_v43 }
  0x6c   : > { %873 = vmatmul.mubr.bf16.gmra.mxu0 %v1678_v44 }
  0x6d   : > { %880 = vmatprep.mubr.bf16.mxu0 %v1679_v45 }
  0x74   : > { %881 = vmatmul.mubr.bf16.gmra.mxu0 %v1681_v47 }
  0x75   : > { %888 = vmatprep.mubr.bf16.mxu0 %v1685_v48 }
  0x7c   : > { %889 = vmatmul.mubr.bf16.gmra.mxu0 %v1687_v51 }
  0x7d   : > { %896 = vmatprep.mubr.bf16.mxu0 %v1691_v52 }
  0x84   : > { %897 = vmatmul.mubr.bf16.gmra.mxu0 %v1693_v55 }
  0xec   : > { %v1444_v56 = vpop.f32.mrf.mxu0 }
  0xee   : > { %v1445_v57 = vpop.f32.mrf.mxu0 }
  0xef   : > { %v1446_v58 = vadd.f32 %v1445_v57, %v1444_v56 }
  0xf0   : > { %v1447_v60 = vpop.f32.mrf.mxu0 }
  0xf1   : > { %v811_v62 = vadd.f32 %v1446_v58, %v2020_v59 }
  0xf2   : > { %v1448_v61 = vpop.f32.mrf.mxu0 }
  0xf3   : > { %v1449_v63 = vadd.f32 %v1448_v61, %v1447_v60  ;;  %v937_v3 = vmax.f32 %v811_v62, 0.0 }
  0xf4   : > { %v1450_v0 = vpop.f32.mrf.mxu0 }
  0xf5   : > { %v814_v1 = vadd.f32 %v1449_v63, %v2020_v59 }
  0xf6   : > { %v1451_v2 = vpop.f32.mrf.mxu0 }
  0xf7   : > { %v938_v4 = vmax.f32 %v814_v1, 0.0  ;;  %v1452_v5 = vadd.f32 %v1451_v2, %v1450_v0  ;;  %v2032_v47 = vpop.f32.mrf.mxu1 }
  0xf8   : > { %v1453_v6 = vpop.f32.mrf.mxu0 }
  0xf9   : > { %v969_v7 = vpack.c.bf16 %v938_v4, %v937_v3  ;;  %v819_v9 = vadd.f32 %v1452_v5, %v2020_v59  ;;  %v2034_v54 = vpop.f32.mrf.mxu1 }
  0xfa   : > { %v1454_v8 = vpop.f32.mrf.mxu0 }
  0xfb   : > { %v1455_v10 = vadd.f32 %v1454_v8, %v1453_v6  ;;  %1580 = vmatprep.mubr.bf16.mxu1 %v969_v7  ;;  %v939_v14 = vmax.f32 %v819_v9, 0.0  ;;  %v2038_v61 = vpop.f32.mrf.mxu1 }
  0xfc   : > { %v1456_v11 = vpop.f32.mrf.mxu0 }
  0xfd   : > { %v822_v12 = vadd.f32 %v1455_v10, %v2020_v59  ;;  %v2040_v4 = vpop.f32.mrf.mxu1 }
  0xfe   : > { %v1457_v13 = vpop.f32.mrf.mxu0 }
  0xff   : > { %v940_v15 = vmax.f32 %v822_v12, 0.0  ;;  %v1458_v16 = vadd.f32 %v1457_v13, %v1456_v11 }
 0x100   : > { %v1459_v17 = vpop.f32.mrf.mxu0 }
 0x101   : > { %v970_v18 = vpack.c.bf16 %v940_v15, %v939_v14  ;;  %v827_v20 = vadd.f32 %v1458_v16, %v2020_v59  ;;  %v2044_v10 = vpop.f32.mrf.mxu1 }
 0x102   : > { %v1460_v19 = vpop.f32.mrf.mxu0 }
 0x103   : > { %v1461_v21 = vadd.f32 %v1460_v19, %v1459_v17  ;;  %1581 = vmatmul.mubr.bf16.vlgmr.msra.gmra.mxu1 %v970_v18  ;;  %v941_v25 = vmax.f32 %v827_v20, 0.0  ;;  %v2046_v17 = vpop.f32.mrf.mxu1 }
 0x104   : > { %v1462_v22 = vpop.f32.mrf.mxu0 }
 0x105   : > { %v830_v23 = vadd.f32 %v1461_v21, %v2020_v59 }
 0x106   : > { %v1463_v24 = vpop.f32.mrf.mxu0 }
 0x107   : > { %v942_v26 = vmax.f32 %v830_v23, 0.0  ;;  %v1464_v27 = vadd.f32 %v1463_v24, %v1462_v22  ;;  %v1525_v23 = vpop.f32.mrf.mxu1 }
 0x108   : > { %v1465_v28 = vpop.f32.mrf.mxu0 }
 0x109   : > { %v971_v29 = vpack.c.bf16 %v942_v26, %v941_v25  ;;  %v835_v31 = vadd.f32 %v1464_v27, %v2020_v59 }
 0x10a   : > { %v1466_v30 = vpop.f32.mrf.mxu0 }
 0x10b   : > { %v1467_v32 = vadd.f32 %v1466_v30, %v1465_v28  ;;  %1584 = vmatprep.mubr.bf16.mxu1 %v971_v29  ;;  %v943_v36 = vmax.f32 %v835_v31, 0.0  ;;  %v1526_v30 = vpop.f32.mrf.mxu1 }
 0x10c   : > { %v1468_v33 = vpop.f32.mrf.mxu0 }
 0x10d   : > { %v838_v34 = vadd.f32 %v1467_v32, %v2020_v59 }
 0x10e   : > { %v1469_v35 = vpop.f32.mrf.mxu0 }
 0x10f   : > { %v944_v37 = vmax.f32 %v838_v34, 0.0  ;;  %v1470_v38 = vadd.f32 %v1469_v35, %v1468_v33 }
 0x110   : > { %v1471_v39 = vpop.f32.mrf.mxu0 }
 0x111   : > { %v972_v40 = vpack.c.bf16 %v944_v37, %v943_v36  ;;  %v843_v42 = vadd.f32 %v1470_v38, %v2020_v59  ;;  %v1528_v36 = vpop.f32.mrf.mxu1 }
 0x112   : > { %v1472_v41 = vpop.f32.mrf.mxu0 }
 0x113   : > { %v1473_v43 = vadd.f32 %v1472_v41, %v1471_v39  ;;  %1585 = vmatmul.mubr.bf16.gmra.mxu1 %v972_v40  ;;  %v945_v48 = vmax.f32 %v843_v42, 0.0 }
 0x114   : > { %v1474_v44 = vpop.f32.mrf.mxu0 }
 0x115   : > { %v846_v45 = vadd.f32 %v1473_v43, %v2020_v59  ;;  %v1529_v43 = vpop.f32.mrf.mxu1 }
 0x116   : > { %v1475_v46 = vpop.f32.mrf.mxu0 }
 0x117   : > { %v946_v49 = vmax.f32 %v846_v45, 0.0  ;;  %v1476_v50 = vadd.f32 %v1475_v46, %v1474_v44 }
 0x118   : > { %v1477_v51 = vpop.f32.mrf.mxu0 }
 0x119   : > { %v973_v52 = vpack.c.bf16 %v946_v49, %v945_v48  ;;  %v851_v55 = vadd.f32 %v1476_v50, %v2020_v59  ;;  %v1531_v50 = vpop.f32.mrf.mxu1 }
 0x11a   : > { %v1478_v53 = vpop.f32.mrf.mxu0 }
 0x11b   : > { %v1479_v56 = vadd.f32 %v1478_v53, %v1477_v51  ;;  %1588 = vmatprep.mubr.bf16.mxu1 %v973_v52  ;;  %v947_v62 = vmax.f32 %v851_v55, 0.0 }
 0x11c   : > { %v1480_v57 = vpop.f32.mrf.mxu0 }
 0x11d   : > { %v854_v58 = vadd.f32 %v1479_v56, %v2020_v59 }
 0x11e   : > { %v1481_v60 = vpop.f32.mrf.mxu0 }
 0x11f   : > { %v948_v63 = vmax.f32 %v854_v58, 0.0  ;;  %v1482_v0 = vadd.f32 %v1481_v60, %v1480_v57  ;;  %v1532_v58 = vpop.f32.mrf.mxu1 }
 0x120   : > { %v1483_v1 = vpop.f32.mrf.mxu0 }
 0x121   : > { %v974_v2 = vpack.c.bf16 %v948_v63, %v947_v62  ;;  %v859_v5 = vadd.f32 %v1482_v0, %v2020_v59 }
 0x122   : > { %v1484_v3 = vpop.f32.mrf.mxu0 }
 0x123   : > { %v1485_v6 = vadd.f32 %v1484_v3, %v1483_v1  ;;  %1589 = vmatmul.mubr.bf16.gmra.mxu1 %v974_v2  ;;  %v949_v11 = vmax.f32 %v859_v5, 0.0  ;;  %v1518_v1 = vadd.f32 %v2034_v54, %v2032_v47  ;;  %v1521_v2 = vadd.f32 %v2040_v4, %v2038_v61  ;;  %v1534_v5 = vpop.f32.mrf.mxu1 }
 0x124   : > { %v1486_v7 = vpop.f32.mrf.mxu0  ;;  %v1524_v47 = vadd.f32 %v2046_v17, %v2044_v10  ;;  %v1527_v54 = vadd.f32 %v1526_v30, %v1525_v23 }
 0x125   : > { %v862_v8 = vadd.f32 %v1485_v6, %v2020_v59 }
 0x126   : > { %v1487_v9 = vpop.f32.mrf.mxu0 }
 0x127   : > { %v950_v12 = vmax.f32 %v862_v8, 0.0  ;;  %v1488_v13 = vadd.f32 %v1487_v9, %v1486_v7 }
 0x128   : > { %v1489_v14 = vpop.f32.mrf.mxu0 }
 0x129   : > { %v975_v15 = vpack.c.bf16 %v950_v12, %v949_v11  ;;  %v867_v18 = vadd.f32 %v1488_v13, %v2020_v59  ;;  %v907_v12 = vadd.f32 %v1518_v1, %v2020_v59  ;;  %v910_v13 = vadd.f32 %v1521_v2, %v2020_v59 }
 0x12a   : > { %v1490_v16 = vpop.f32.mrf.mxu0 }
 0x12b   : > { %v1491_v19 = vadd.f32 %v1490_v16, %v1489_v14  ;;  %1592 = vmatprep.mubr.bf16.mxu1 %v975_v15  ;;  %v951_v24 = vmax.f32 %v867_v18, 0.0  ;;  %v1535_v15 = vpop.f32.mrf.mxu1  ;;  %v961_v4 = vmax.f32 %v907_v12, 0.0 }
 0x12c   : > { %v1492_v20 = vpop.f32.mrf.mxu0 }
 0x12d   : > { %v870_v21 = vadd.f32 %v1491_v19, %v2020_v59  ;;  %v962_v19 = vmax.f32 %v910_v13, 0.0 }
 0x12e   : > { %v1493_v22 = vpop.f32.mrf.mxu0 }
 0x12f   : > { %v952_v25 = vmax.f32 %v870_v21, 0.0  ;;  %v1494_v26 = vadd.f32 %v1493_v22, %v1492_v20  ;;  %v1530_v20 = vadd.f32 %v1529_v43, %v1528_v36  ;;  %v1533_v21 = vadd.f32 %v1532_v58, %v1531_v50  ;;  %v1537_v22 = vpop.f32.mrf.mxu1  ;;  %v2075_v43 = vld [vmem:[%s2156_s5] ss:$0 sm:$0xff] }
 0x130   : > { %v1495_v27 = vpop.f32.mrf.mxu0  ;;  %v981_v17 = vpack.c.bf16 %v962_v19, %v961_v4 }
 0x131   : > { %v976_v28 = vpack.c.bf16 %v952_v25, %v951_v24  ;;  %v875_v31 = vadd.f32 %v1494_v26, %v2020_v59  ;;  %v915_v26 = vadd.f32 %v1524_v47, %v2020_v59  ;;  %v1538_v10 = vpop.f32.mrf.mxu1 }
 0x132   : > { %v1496_v29 = vpop.f32.mrf.mxu0 }
 0x133   : > { %v1497_v32 = vadd.f32 %v1496_v29, %v1495_v27  ;;  %1593 = vmatmul.mubr.bf16.gmra.mxu1 %v976_v28  ;;  %v953_v37 = vmax.f32 %v875_v31, 0.0  ;;  %v918_v27 = vadd.f32 %v1527_v54, %v2020_v59  ;;  %v923_v29 = vadd.f32 %v1530_v20, %v2020_v59 }
 0x134   : > { %v1498_v33 = vpop.f32.mrf.mxu0  ;;  %v926_v31 = vadd.f32 %v1533_v21, %v2020_v59  ;;  %v963_v23 = vmax.f32 %v915_v26, 0.0 }
 0x135   : > { %v878_v34 = vadd.f32 %v1497_v32, %v2020_v59  ;;  %v964_v30 = vmax.f32 %v918_v27, 0.0  ;;  %v1536_v32 = vadd.f32 %v1535_v15, %v1534_v5 }
 0x136   : > { %v1499_v35 = vpop.f32.mrf.mxu0 }
 0x137   : > { %v954_v38 = vmax.f32 %v878_v34, 0.0  ;;  %v1500_v39 = vadd.f32 %v1499_v35, %v1498_v33  ;;  %v1539_v33 = vadd.f32 %v1538_v10, %v1537_v22  ;;  %v965_v34 = vmax.f32 %v923_v29, 0.0 }
 0x138   : > { %v1501_v40 = vpop.f32.mrf.mxu0  ;;  %v966_v35 = vmax.f32 %v926_v31, 0.0  ;;  %v931_v36 = vadd.f32 %v1536_v32, %v2020_v59 }
 0x139   : > { %v977_v41 = vpack.c.bf16 %v954_v38, %v953_v37  ;;  %v883_v44 = vadd.f32 %v1500_v39, %v2020_v59  ;;  %v934_v37 = vadd.f32 %v1539_v33, %v2020_v59  ;;  %v982_v38 = vpack.c.bf16 %v964_v30, %v963_v23 }
 0x13a   : > { %v1502_v42 = vpop.f32.mrf.mxu0  ;;  %v983_v39 = vpack.c.bf16 %v966_v35, %v965_v34 }
 0x13b   : > { %v1503_v45 = vadd.f32 %v1502_v42, %v1501_v40  ;;  %1596 = vmatprep.mubr.bf16.mxu1 %v977_v41  ;;  %v955_v51 = vmax.f32 %v883_v44, 0.0  ;;  %v967_v40 = vmax.f32 %v931_v36, 0.0  ;;  %v968_v41 = vmax.f32 %v934_v37, 0.0 }
 0x13c   : > { %v1504_v46 = vpop.f32.mrf.mxu0 }
 0x13d   : > { %v886_v48 = vadd.f32 %v1503_v45, %v2020_v59  ;;  %v984_v42 = vpack.c.bf16 %v968_v41, %v967_v40 }
 0x13e   : > { %v1505_v49 = vpop.f32.mrf.mxu0 }
 0x13f   : > { %v956_v52 = vmax.f32 %v886_v48, 0.0  ;;  %v1506_v53 = vadd.f32 %v1505_v49, %v1504_v46 }
 0x140   : > { %v1507_v55 = vpop.f32.mrf.mxu0 }
 0x141   : > { %v978_v56 = vpack.c.bf16 %v956_v52, %v955_v51  ;;  %v891_v60 = vadd.f32 %v1506_v53, %v2020_v59 }
 0x142   : > { %v1508_v57 = vpop.f32.mrf.mxu0 }
 0x143   : > { %v1509_v62 = vadd.f32 %v1508_v57, %v1507_v55  ;;  %1597 = vmatmul.mubr.bf16.gmra.mxu1 %v978_v56  ;;  %v957_v6 = vmax.f32 %v891_v60, 0.0 }
 0x144   : > { %v1510_v63 = vpop.f32.mrf.mxu0 }
 0x145   : > { %v894_v0 = vadd.f32 %v1509_v62, %v2020_v59 }
 0x146   : > { %v1511_v3 = vpop.f32.mrf.mxu0 }
 0x147   : > { %v958_v7 = vmax.f32 %v894_v0, 0.0  ;;  %v1512_v8 = vadd.f32 %v1511_v3, %v1510_v63 }
 0x148   : > { %v1513_v9 = vpop.f32.mrf.mxu0 }
 0x149   : > { %v979_v11 = vpack.c.bf16 %v958_v7, %v957_v6  ;;  %v899_v16 = vadd.f32 %v1512_v8, %v2020_v59 }
 0x14a   : > { %v1514_v14 = vpop.f32.mrf.mxu0 }
 0x14b   : > { %v1515_v18 = vadd.f32 %v1514_v14, %v1513_v9  ;;  %1600 = vmatprep.mubr.bf16.mxu1 %v979_v11  ;;  %v959_v24 = vmax.f32 %v899_v16, 0.0 }
 0x14d   : > { %v902_v61 = vadd.f32 %v1515_v18, %v2020_v59 }
 0x14f   : > { %v960_v25 = vmax.f32 %v902_v61, 0.0 }
 0x151   : > { %v980_v28 = vpack.c.bf16 %v960_v25, %v959_v24 }
 0x153   : > { %1601 = vmatmul.mubr.bf16.gmra.mxu1 %v980_v28 }
 0x154   : > { %1604 = vmatprep.mubr.bf16.mxu1 %v981_v17 }
 0x15b   : > { %1605 = vmatmul.mubr.bf16.gmra.mxu1 %v982_v38 }
 0x15c   : > { %1608 = vmatprep.mubr.bf16.mxu1 %v983_v39 }
 0x163   : > { %1609 = vmatmul.mubr.bf16.gmra.mxu1 %v984_v42 }
 0x1c3   : > { %v1582_v59 = vpop.f32.mrf.mxu1 }
 0x1c4   : > { %v1099_v44 = vadd.f32 %v1582_v59, %v2075_v43 }
 0x1c5   : > { %v1090_v45 = vpop.f32.mrf.mxu1 }
 0x1c6   : > { %1219 = vst [vmem:[%s2082_s10 + $0x10] sm:$0xff] %v1099_v44  ;;  %v1091_v46 = vadd.f32 %v2075_v43, %v1090_v45 }
 0x1c7   : > { %v1583_v48 = vpop.f32.mrf.mxu1 }
 0x1c8   : > { %1217 = vst [vmem:[%s2082_s10] sm:$0xff] %v1091_v46  ;;  %v1102_v49 = vadd.f32 %v1583_v48, %v2075_v43 }
 0x1c9   : > { %v1093_v50 = vpop.f32.mrf.mxu1 }
 0x1ca   : > { %1220 = vst [vmem:[%s2082_s10 + $0x18] sm:$0xff] %v1102_v49  ;;  %v1094_v51 = vadd.f32 %v2075_v43, %v1093_v50 }
 0x1cc   : > { %1218 = vst [vmem:[%s2082_s10 + $0x8] sm:$0xff] %v1094_v51 }
 0x1d3   : > { %v1586_v52 = vpop.f32.mrf.mxu1 }
 0x1d4   : > { %v1115_v53 = vadd.f32 %v1586_v52, %v2075_v43 }
 0x1d5   : > { %v1106_v55 = vpop.f32.mrf.mxu1 }
 0x1d6   : > { %1223 = vst [vmem:[%s2082_s10 + $0x30] sm:$0xff] %v1115_v53  ;;  %v1107_v56 = vadd.f32 %v2075_v43, %v1106_v55 }
 0x1d7   : > { %v1587_v57 = vpop.f32.mrf.mxu1 }
 0x1d8   : > { %1221 = vst [vmem:[%s2082_s10 + $0x20] sm:$0xff] %v1107_v56  ;;  %v1118_v58 = vadd.f32 %v1587_v57, %v2075_v43 }
 0x1d9   : > { %v1109_v60 = vpop.f32.mrf.mxu1 }
 0x1da   : > { %1224 = vst [vmem:[%s2082_s10 + $0x38] sm:$0xff] %v1118_v58  ;;  %v1110_v62 = vadd.f32 %v2075_v43, %v1109_v60 }
 0x1dc   : > { %1222 = vst [vmem:[%s2082_s10 + $0x28] sm:$0xff] %v1110_v62 }
 0x1e3   : > { %v1590_v63 = vpop.f32.mrf.mxu1 }
 0x1e4   : > { %v1131_v0 = vadd.f32 %v1590_v63, %v2075_v43 }
 0x1e5   : > { %v1122_v1 = vpop.f32.mrf.mxu1 }
 0x1e6   : > { %1227 = vst [vmem:[%s2082_s10 + $0x50] sm:$0xff] %v1131_v0  ;;  %v1123_v2 = vadd.f32 %v2075_v43, %v1122_v1 }
 0x1e7   : > { %v1591_v3 = vpop.f32.mrf.mxu1 }
 0x1e8   : > { %1225 = vst [vmem:[%s2082_s10 + $0x40] sm:$0xff] %v1123_v2  ;;  %v1134_v5 = vadd.f32 %v1591_v3, %v2075_v43 }
 0x1e9   : > { %v1125_v6 = vpop.f32.mrf.mxu1 }
 0x1ea   : > { %1228 = vst [vmem:[%s2082_s10 + $0x58] sm:$0xff] %v1134_v5  ;;  %v1126_v7 = vadd.f32 %v2075_v43, %v1125_v6 }
 0x1ec   : > { %1226 = vst [vmem:[%s2082_s10 + $0x48] sm:$0xff] %v1126_v7 }
 0x1f3   : > { %v1594_v8 = vpop.f32.mrf.mxu1 }
 0x1f4   : > { %v1147_v9 = vadd.f32 %v1594_v8, %v2075_v43 }
 0x1f5   : > { %v1138_v11 = vpop.f32.mrf.mxu1 }
 0x1f6   : > { %1231 = vst [vmem:[%s2082_s10 + $0x70] sm:$0xff] %v1147_v9  ;;  %v1139_v12 = vadd.f32 %v2075_v43, %v1138_v11 }
 0x1f7   : > { %v1595_v13 = vpop.f32.mrf.mxu1 }
 0x1f8   : > { %1229 = vst [vmem:[%s2082_s10 + $0x60] sm:$0xff] %v1139_v12  ;;  %v1150_v14 = vadd.f32 %v1595_v13, %v2075_v43 }
 0x1f9   : > { %v1141_v15 = vpop.f32.mrf.mxu1 }
 0x1fa   : > { %1232 = vst [vmem:[%s2082_s10 + $0x78] sm:$0xff] %v1150_v14  ;;  %v1142_v16 = vadd.f32 %v2075_v43, %v1141_v15 }
 0x1fc   : > { %1230 = vst [vmem:[%s2082_s10 + $0x68] sm:$0xff] %v1142_v16 }
 0x203   : > { %v1598_v18 = vpop.f32.mrf.mxu1 }
 0x204   : > { %v1163_v47 = vadd.f32 %v1598_v18, %v2075_v43 }
 0x205   : > { %v1154_v54 = vpop.f32.mrf.mxu1 }
 0x206   : > { %1235 = vst [vmem:[%s2082_s10 + $0x90] sm:$0xff] %v1163_v47  ;;  %v1155_v61 = vadd.f32 %v2075_v43, %v1154_v54 }
 0x207   : > { %v1599_v4 = vpop.f32.mrf.mxu1 }
 0x208   : > { %1233 = vst [vmem:[%s2082_s10 + $0x80] sm:$0xff] %v1155_v61  ;;  %v1166_v19 = vadd.f32 %v1599_v4, %v2075_v43 }
 0x209   : > { %v1157_v20 = vpop.f32.mrf.mxu1 }
 0x20a   : > { %1236 = vst [vmem:[%s2082_s10 + $0x98] sm:$0xff] %v1166_v19  ;;  %v1158_v21 = vadd.f32 %v2075_v43, %v1157_v20 }
 0x20c   : > { %1234 = vst [vmem:[%s2082_s10 + $0x88] sm:$0xff] %v1158_v21 }
 0x213   : > { %v1602_v22 = vpop.f32.mrf.mxu1 }
 0x214   : > { %v1179_v24 = vadd.f32 %v1602_v22, %v2075_v43 }
 0x215   : > { %v1170_v25 = vpop.f32.mrf.mxu1 }
 0x216   : > { %1239 = vst [vmem:[%s2082_s10 + $0xb0] sm:$0xff] %v1179_v24  ;;  %v1171_v26 = vadd.f32 %v2075_v43, %v1170_v25 }
 0x217   : > { %v1603_v27 = vpop.f32.mrf.mxu1 }
 0x218   : > { %1237 = vst [vmem:[%s2082_s10 + $0xa0] sm:$0xff] %v1171_v26  ;;  %v1182_v28 = vadd.f32 %v1603_v27, %v2075_v43 }
 0x219   : > { %v1173_v29 = vpop.f32.mrf.mxu1 }
 0x21a   : > { %1240 = vst [vmem:[%s2082_s10 + $0xb8] sm:$0xff] %v1182_v28  ;;  %v1174_v31 = vadd.f32 %v2075_v43, %v1173_v29 }
 0x21b   : > { %v1606_v10 = vpop.f32.mrf.mxu1 }
 0x21c   : > { %1238 = vst [vmem:[%s2082_s10 + $0xa8] sm:$0xff] %v1174_v31  ;;  %v1195_v17 = vadd.f32 %v1606_v10, %v2075_v43 }
 0x21d   : > { %v1186_v23 = vpop.f32.mrf.mxu1 }
 0x21e   : > { %1243 = vst [vmem:[%s2082_s10 + $0xd0] sm:$0xff] %v1195_v17  ;;  %v1187_v30 = vadd.f32 %v2075_v43, %v1186_v23 }
 0x21f   : > { %v1607_v32 = vpop.f32.mrf.mxu1 }
 0x220   : > { %1241 = vst [vmem:[%s2082_s10 + $0xc0] sm:$0xff] %v1187_v30  ;;  %v1198_v33 = vadd.f32 %v1607_v32, %v2075_v43 }
 0x221   : > { %v1189_v34 = vpop.f32.mrf.mxu1 }
 0x222   : > { %1244 = vst [vmem:[%s2082_s10 + $0xd8] sm:$0xff] %v1198_v33  ;;  %v1190_v35 = vadd.f32 %v2075_v43, %v1189_v34 }
 0x223   : > { %v1610_v36 = vpop.f32.mrf.mxu1 }
 0x224   : > { %1242 = vst [vmem:[%s2082_s10 + $0xc8] sm:$0xff] %v1190_v35  ;;  %v1211_v37 = vadd.f32 %v1610_v36, %v2075_v43 }
 0x225   : > { %v1202_v38 = vpop.f32.mrf.mxu1 }
 0x226   : > { %1247 = vst [vmem:[%s2082_s10 + $0xf0] sm:$0xff] %v1211_v37  ;;  %v1203_v39 = vadd.f32 %v2075_v43, %v1202_v38 }
 0x227   : > { %v1611_v40 = vpop.f32.mrf.mxu1 }
 0x228   : > { %1245 = vst [vmem:[%s2082_s10 + $0xe0] sm:$0xff] %v1203_v39  ;;  %v1214_v41 = vadd.f32 %v1611_v40, %v2075_v43 }
 0x229   : > { %v1205_v42 = vpop.f32.mrf.mxu1 }
 0x22a   : > { %1248 = vst [vmem:[%s2082_s10 + $0xf8] sm:$0xff] %v1214_v41  ;;  %v1206_v59 = vadd.f32 %v2075_v43, %v1205_v42 }
 0x22c   : > { %1246 = vst [vmem:[%s2082_s10 + $0xe8] sm:$0xff] %v1206_v59 }
 0x22d PF: > { %s18_s24 = sadd.s32 1, %s1714_s24  }
 0x22e   : > { %p15_p4 = scmp.ge.s32.totalorder %s18_s24, 4  }
 0x230   :  { %17 = sbr.rel (!%p15_p4) target bundleno = 1 (0x1), region = 89 }

// kernel: simgcn_forward.6
= control target key start
LH: loop header
LB: loop body
LE: loop exit
PB: predicated region body
PF: predicated region fallthrough
CT: control target
= control target key end

     0   :  { %s2364_s12 = smov 0   ;;  %s2366_s13 = smov 0   ;;  %s2621_s0 = inlined_call_operand.vmem [shape: bf16[512,512], index: 0, kind: input, shape index: {}]   ;;  %s2622_s1 = inlined_call_operand.vmem [shape: bf16[512,128], index: 1, kind: input, shape index: {}]   ;;  %s2623_s2 = inlined_call_operand.vmem [shape: f32[1,128], index: 2, kind: input, shape index: {}]   ;;  %s2624_s3 = inlined_call_operand.vmem [shape: bf16[512,128], index: 3, kind: output, shape index: {}]  }
   0x1   :  { %s2368_s14 = smov 0  }
   0x2 LB: > { %s25_s15 = sadd.s32 1, %s2338_s13  ;;  %p1679_p0 = scmp.ge.s32.totalorder %s2342_s14, 1  ;;  %s2342_s14 = sphi %s2368_s14, %s13_s14   ;;  %s2338_s13 = sphi %s2366_s13, %s2626_s13   ;;  %s2334_s12 = sphi %s2364_s12, %s2625_s12  }
   0x3   : > { %p27_p1 = scmp.ge.s32.totalorder %s25_s15, 2  ;;  %p169_p2 = scmp.lt.s32.totalorder %s2342_s14, 3 }
   0x5   : > { %s2628_s15 = smov (%p27_p1, %s25_s15), 0  ;;  %p170_p3 = pnand %p1679_p0, %p169_p2 }
   0x6   : > { %s1680_s25 = sshll.u32 (!%p170_p3), %s2334_s12, 5 }
   0x7   : > { %173 = sbr.rel (%p170_p3) target bundleno = 377 (0x179), region = 32  ;;  %p205_p4 = scmp.lt.s32.totalorder (!%p170_p3), %s1680_s25, 63 }
   0xc   : > { %v2192_v0 = vld [vmem:[%s2622_s1 + $0x78] sm:$0xff]   ;;  %v2196_v4 = vld [vmem:[%s2622_s1 + $0x70] sm:$0xff]   ;;  %v2200_v8 = vld [vmem:[%s2622_s1 + $0x68] sm:$0xff]   ;;  %s2630_s25 = smov (!%p205_p4, %s1680_s25), 63 }
   0xd   : > { %v2193_v1 = vld [vmem:[%s2622_s1 + $0xf8] sm:$0xff]   ;;  %1944 = vmatprep.subr.bf16.mxu0 %v2192_v0  ;;  %v2197_v5 = vld [vmem:[%s2622_s1 + $0xf0] sm:$0xff]   ;;  %v2201_v9 = vld [vmem:[%s2622_s1 + $0xe8] sm:$0xff]   ;;  %s1816_s24 = sshll.u32 %s2630_s25, 4  ;;  %s1684_s17 = sshll.u32 %s2630_s25, 2 }
   0xe   : > { %v2194_v2 = vld [vmem:[%s2622_s1 + $0x38] sm:$0xff]   ;;  %2056 = vmatprep.subr.bf16.mxu1 %v2193_v1  ;;  %v2198_v6 = vld [vmem:[%s2622_s1 + $0x30] sm:$0xff]   ;;  %v2202_v10 = vld [vmem:[%s2622_s1 + $0x28] sm:$0xff]   ;;  %s2481_s12 = scalar_lea.vmem %s2621_s0, %s1816_s24  ;;  %s2564_s20 = scalar_lea.vmem %s2624_s3, %s1684_s17 }
   0xf   : > { %v2195_v3 = vld [vmem:[%s2622_s1 + $0xb8] sm:$0xff]   ;;  %1945 = vmatpush3.bf16.msra.mxu0 %v2194_v2  ;;  %v2199_v7 = vld [vmem:[%s2622_s1 + $0xb0] sm:$0xff]   ;;  %v2203_v11 = vld [vmem:[%s2622_s1 + $0xa8] sm:$0xff]  }
  0x10   : > { %2057 = vmatpush3.bf16.msra.mxu1 %v2195_v3  ;;  %1946 = vmatprep.subr.bf16.mxu0 %v2196_v4  ;;  %v2204_v12 = vld [vmem:[%s2622_s1 + $0x60] sm:$0xff]   ;;  %v2208_v16 = vld [vmem:[%s2622_s1 + $0x58] sm:$0xff]   ;;  %v2212_v20 = vld [vmem:[%s2622_s1 + $0x50] sm:$0xff]  }
  0x11   : > { %2058 = vmatprep.subr.bf16.mxu1 %v2197_v5  ;;  %v2205_v13 = vld [vmem:[%s2622_s1 + $0xe0] sm:$0xff]   ;;  %v2209_v17 = vld [vmem:[%s2622_s1 + $0xd8] sm:$0xff]   ;;  %v2213_v21 = vld [vmem:[%s2622_s1 + $0xd0] sm:$0xff]  }
  0x12   : > { %v2206_v14 = vld [vmem:[%s2622_s1 + $0x20] sm:$0xff]   ;;  %v2210_v18 = vld [vmem:[%s2622_s1 + $0x18] sm:$0xff]   ;;  %v2214_v22 = vld [vmem:[%s2622_s1 + $0x10] sm:$0xff]  }
  0x13   : > { %1947 = vmatpush3.bf16.msra.mxu0 %v2198_v6  ;;  %v2207_v15 = vld [vmem:[%s2622_s1 + $0xa0] sm:$0xff]   ;;  %v2211_v19 = vld [vmem:[%s2622_s1 + $0x98] sm:$0xff]   ;;  %v2215_v23 = vld [vmem:[%s2622_s1 + $0x90] sm:$0xff]  }
  0x14   : > { %2059 = vmatpush3.bf16.msra.mxu1 %v2199_v7  ;;  %1948 = vmatprep.subr.bf16.mxu0 %v2200_v8  ;;  %v2216_v24 = vld [vmem:[%s2622_s1 + $0x48] sm:$0xff]   ;;  %v2220_v28 = vld [vmem:[%s2622_s1 + $0x40] sm:$0xff]  }
  0x15   : > { %2060 = vmatprep.subr.bf16.mxu1 %v2201_v9  ;;  %v2217_v25 = vld [vmem:[%s2622_s1 + $0xc8] sm:$0xff]   ;;  %v2221_v29 = vld [vmem:[%s2622_s1 + $0xc0] sm:$0xff]  }
  0x16   : > { %v2218_v26 = vld [vmem:[%s2622_s1 + $0x8] sm:$0xff]   ;;  %v2222_v30 = vld [vmem:[%s2622_s1] sm:$0xff]  }
  0x17   : > { %1949 = vmatpush3.bf16.msra.mxu0 %v2202_v10  ;;  %v2219_v27 = vld [vmem:[%s2622_s1 + $0x88] sm:$0xff]   ;;  %v2223_v31 = vld [vmem:[%s2622_s1 + $0x80] sm:$0xff]  }
  0x18   : > { %2061 = vmatpush3.bf16.msra.mxu1 %v2203_v11  ;;  %1950 = vmatprep.subr.bf16.mxu0 %v2204_v12  ;;  %v2224_v32 = vld [vmem:[%s2481_s12] ss:$16 sps:$4 sm:$0xff]   ;;  %v2226_v33 = vld [vmem:[%s2481_s12 + $0x4] ss:$16 sps:$4 sm:$0xff]   ;;  %v2227_v34 = vld [vmem:[%s2481_s12 + $0x8] ss:$16 sps:$4 sm:$0xff]  }
  0x19   : > { %2062 = vmatprep.subr.bf16.mxu1 %v2205_v13  ;;  %v2229_v35 = vld [vmem:[%s2481_s12 + $0xc] ss:$16 sps:$4 sm:$0xff]   ;;  %968 = vmatprep.mubr.bf16.mxu0 %v2226_v33  ;;  %v2230_v36 = vld [vmem:[%s2481_s12 + $0x24] ss:$16 sps:$4 sm:$0xff]   ;;  %v2234_v38 = vld [vmem:[%s2481_s12 + $0x20] ss:$16 sps:$4 sm:$0xff]  }
  0x1a   : > { %1129 = vmatprep.mubr.bf16.mxu1 %v2229_v35  ;;  %v2232_v37 = vld [vmem:[%s2481_s12 + $0x2c] ss:$16 sps:$4 sm:$0xff]   ;;  %v2235_v39 = vld [vmem:[%s2481_s12 + $0x28] ss:$16 sps:$4 sm:$0xff]   ;;  %v2236_v40 = vld [vmem:[%s2481_s12 + $0x44] ss:$16 sps:$4 sm:$0xff]  }
  0x1b   : > { %1951 = vmatpush3.bf16.msra.mxu0 %v2206_v14  ;;  %v2238_v41 = vld [vmem:[%s2481_s12 + $0x4c] ss:$16 sps:$4 sm:$0xff]   ;;  %v2240_v42 = vld [vmem:[%s2481_s12 + $0x40] ss:$16 sps:$4 sm:$0xff]   ;;  %v2241_v43 = vld [vmem:[%s2481_s12 + $0x48] ss:$16 sps:$4 sm:$0xff]  }
  0x1c   : > { %2063 = vmatpush3.bf16.msra.mxu1 %v2207_v15  ;;  %1952 = vmatprep.subr.bf16.mxu0 %v2208_v16  ;;  %v2242_v44 = vld [vmem:[%s2481_s12 + $0x64] ss:$16 sps:$4 sm:$0xff]   ;;  %v2244_v45 = vld [vmem:[%s2481_s12 + $0x6c] ss:$16 sps:$4 sm:$0xff]   ;;  %v2246_v46 = vld [vmem:[%s2481_s12 + $0x60] ss:$16 sps:$4 sm:$0xff]  }
  0x1d   : > { %2064 = vmatprep.subr.bf16.mxu1 %v2209_v17  ;;  %v2247_v47 = vld [vmem:[%s2481_s12 + $0x68] ss:$16 sps:$4 sm:$0xff]   ;;  %v2248_v48 = vld [vmem:[%s2481_s12 + $0x84] ss:$16 sps:$4 sm:$0xff]   ;;  %v2250_v49 = vld [vmem:[%s2481_s12 + $0x8c] ss:$16 sps:$4 sm:$0xff]  }
  0x1e   : > { %v2252_v50 = vld [vmem:[%s2481_s12 + $0x80] ss:$16 sps:$4 sm:$0xff]   ;;  %v2253_v51 = vld [vmem:[%s2481_s12 + $0x88] ss:$16 sps:$4 sm:$0xff]   ;;  %v2254_v52 = vld [vmem:[%s2481_s12 + $0xa4] ss:$16 sps:$4 sm:$0xff]  }
  0x1f   : > { %1953 = vmatpush3.bf16.msra.mxu0 %v2210_v18  ;;  %v2256_v53 = vld [vmem:[%s2481_s12 + $0xac] ss:$16 sps:$4 sm:$0xff]   ;;  %v2258_v54 = vld [vmem:[%s2481_s12 + $0xa0] ss:$16 sps:$4 sm:$0xff]   ;;  %v2259_v55 = vld [vmem:[%s2481_s12 + $0xa8] ss:$16 sps:$4 sm:$0xff]  }
  0x20   : > { %2065 = vmatpush3.bf16.msra.mxu1 %v2211_v19  ;;  %1954 = vmatprep.subr.bf16.mxu0 %v2212_v20  ;;  %v2260_v56 = vld [vmem:[%s2481_s12 + $0xc4] ss:$16 sps:$4 sm:$0xff]   ;;  %v2262_v57 = vld [vmem:[%s2481_s12 + $0xcc] ss:$16 sps:$4 sm:$0xff]   ;;  %v2264_v58 = vld [vmem:[%s2481_s12 + $0xc0] ss:$16 sps:$4 sm:$0xff]  }
  0x21   : > { %2066 = vmatprep.subr.bf16.mxu1 %v2213_v21  ;;  %v2265_v59 = vld [vmem:[%s2481_s12 + $0xc8] ss:$16 sps:$4 sm:$0xff]   ;;  %v2266_v60 = vld [vmem:[%s2481_s12 + $0xe4] ss:$16 sps:$4 sm:$0xff]   ;;  %v2268_v61 = vld [vmem:[%s2481_s12 + $0xec] ss:$16 sps:$4 sm:$0xff]  }
  0x22   : > { %v2270_v62 = vld [vmem:[%s2481_s12 + $0xe0] ss:$16 sps:$4 sm:$0xff]   ;;  %v2271_v63 = vld [vmem:[%s2481_s12 + $0xe8] ss:$16 sps:$4 sm:$0xff]   ;;  %v2272_v0 = vld [vmem:[%s2481_s12 + $0x104] ss:$16 sps:$4 sm:$0xff]  }
  0x23   : > { %1955 = vmatpush3.bf16.msra.mxu0 %v2214_v22  ;;  %v2274_v1 = vld [vmem:[%s2481_s12 + $0x10c] ss:$16 sps:$4 sm:$0xff]   ;;  %v2276_v2 = vld [vmem:[%s2481_s12 + $0x100] ss:$16 sps:$4 sm:$0xff]   ;;  %v2277_v3 = vld [vmem:[%s2481_s12 + $0x108] ss:$16 sps:$4 sm:$0xff]  }
  0x24   : > { %2067 = vmatpush3.bf16.msra.mxu1 %v2215_v23  ;;  %1956 = vmatprep.subr.bf16.mxu0 %v2216_v24  ;;  %v2278_v4 = vld [vmem:[%s2481_s12 + $0x124] ss:$16 sps:$4 sm:$0xff]   ;;  %v2280_v5 = vld [vmem:[%s2481_s12 + $0x12c] ss:$16 sps:$4 sm:$0xff]   ;;  %v2282_v6 = vld [vmem:[%s2481_s12 + $0x120] ss:$16 sps:$4 sm:$0xff]  }
  0x25   : > { %2068 = vmatprep.subr.bf16.mxu1 %v2217_v25  ;;  %v2283_v7 = vld [vmem:[%s2481_s12 + $0x128] ss:$16 sps:$4 sm:$0xff]   ;;  %v2284_v8 = vld [vmem:[%s2481_s12 + $0x144] ss:$16 sps:$4 sm:$0xff]   ;;  %v2286_v9 = vld [vmem:[%s2481_s12 + $0x14c] ss:$16 sps:$4 sm:$0xff]  }
  0x26   : > { %v2288_v10 = vld [vmem:[%s2481_s12 + $0x140] ss:$16 sps:$4 sm:$0xff]   ;;  %v2289_v11 = vld [vmem:[%s2481_s12 + $0x148] ss:$16 sps:$4 sm:$0xff]   ;;  %v2290_v12 = vld [vmem:[%s2481_s12 + $0x164] ss:$16 sps:$4 sm:$0xff]  }
  0x27   : > { %1957 = vmatpush3.bf16.msra.mxu0 %v2218_v26  ;;  %v2292_v13 = vld [vmem:[%s2481_s12 + $0x16c] ss:$16 sps:$4 sm:$0xff]   ;;  %v2294_v14 = vld [vmem:[%s2481_s12 + $0x160] ss:$16 sps:$4 sm:$0xff]   ;;  %v2295_v15 = vld [vmem:[%s2481_s12 + $0x168] ss:$16 sps:$4 sm:$0xff]  }
  0x28   : > { %2069 = vmatpush3.bf16.msra.mxu1 %v2219_v27  ;;  %1958 = vmatprep.subr.bf16.mxu0 %v2220_v28  ;;  %v2296_v16 = vld [vmem:[%s2481_s12 + $0x184] ss:$16 sps:$4 sm:$0xff]   ;;  %v2298_v17 = vld [vmem:[%s2481_s12 + $0x18c] ss:$16 sps:$4 sm:$0xff]   ;;  %v2300_v18 = vld [vmem:[%s2481_s12 + $0x180] ss:$16 sps:$4 sm:$0xff]  }
  0x29   : > { %2070 = vmatprep.subr.bf16.mxu1 %v2221_v29  ;;  %v2301_v19 = vld [vmem:[%s2481_s12 + $0x188] ss:$16 sps:$4 sm:$0xff]   ;;  %v2302_v20 = vld [vmem:[%s2481_s12 + $0x1a4] ss:$16 sps:$4 sm:$0xff]   ;;  %v2304_v21 = vld [vmem:[%s2481_s12 + $0x1ac] ss:$16 sps:$4 sm:$0xff]  }
  0x2a   : > { %v2306_v22 = vld [vmem:[%s2481_s12 + $0x1a0] ss:$16 sps:$4 sm:$0xff]   ;;  %v2307_v23 = vld [vmem:[%s2481_s12 + $0x1a8] ss:$16 sps:$4 sm:$0xff]   ;;  %v2308_v24 = vld [vmem:[%s2481_s12 + $0x1c4] ss:$16 sps:$4 sm:$0xff]  }
  0x2b   : > { %1959 = vmatpush3.bf16.msra.mxu0 %v2222_v30  ;;  %v2310_v25 = vld [vmem:[%s2481_s12 + $0x1cc] ss:$16 sps:$4 sm:$0xff]   ;;  %v2312_v26 = vld [vmem:[%s2481_s12 + $0x1c0] ss:$16 sps:$4 sm:$0xff]   ;;  %v2313_v27 = vld [vmem:[%s2481_s12 + $0x1c8] ss:$16 sps:$4 sm:$0xff]  }
  0x2c   : > { %2071 = vmatpush3.bf16.msra.mxu1 %v2223_v31  ;;  %v2314_v28 = vld [vmem:[%s2481_s12 + $0x1e4] ss:$16 sps:$4 sm:$0xff]   ;;  %v2316_v29 = vld [vmem:[%s2481_s12 + $0x1ec] ss:$16 sps:$4 sm:$0xff]   ;;  %v2318_v30 = vld [vmem:[%s2481_s12 + $0x1e0] ss:$16 sps:$4 sm:$0xff]  }
  0x2d   : > { %v2319_v31 = vld [vmem:[%s2481_s12 + $0x1e8] ss:$16 sps:$4 sm:$0xff]  }
  0x2e   : > { %969 = vmatmul.mubr.bf16.vlgmr.msra.gmra.mxu0 %v2224_v32 }
  0x2f   : > { %1130 = vmatmul.mubr.bf16.vlgmr.msra.gmra.mxu1 %v2227_v34  ;;  %976 = vmatprep.mubr.bf16.mxu0 %v2230_v36 }
  0x30   : > { %1137 = vmatprep.mubr.bf16.mxu1 %v2232_v37 }
  0x36   : > { %977 = vmatmul.mubr.bf16.gmra.mxu0 %v2234_v38 }
  0x37   : > { %1138 = vmatmul.mubr.bf16.gmra.mxu1 %v2235_v39  ;;  %984 = vmatprep.mubr.bf16.mxu0 %v2236_v40 }
  0x38   : > { %1145 = vmatprep.mubr.bf16.mxu1 %v2238_v41 }
  0x3e   : > { %985 = vmatmul.mubr.bf16.gmra.mxu0 %v2240_v42  ;;  %v2556_v42 = vld [vmem:[%s2623_s2] ss:$0 sm:$0xff] }
  0x3f   : > { %1146 = vmatmul.mubr.bf16.gmra.mxu1 %v2241_v43  ;;  %992 = vmatprep.mubr.bf16.mxu0 %v2242_v44 }
  0x40   : > { %1153 = vmatprep.mubr.bf16.mxu1 %v2244_v45 }
  0x46   : > { %993 = vmatmul.mubr.bf16.gmra.mxu0 %v2246_v46 }
  0x47   : > { %1154 = vmatmul.mubr.bf16.gmra.mxu1 %v2247_v47  ;;  %1000 = vmatprep.mubr.bf16.mxu0 %v2248_v48 }
  0x48   : > { %1161 = vmatprep.mubr.bf16.mxu1 %v2250_v49 }
  0x4e   : > { %1001 = vmatmul.mubr.bf16.gmra.mxu0 %v2252_v50 }
  0x4f   : > { %1162 = vmatmul.mubr.bf16.gmra.mxu1 %v2253_v51  ;;  %1008 = vmatprep.mubr.bf16.mxu0 %v2254_v52 }
  0x50   : > { %1169 = vmatprep.mubr.bf16.mxu1 %v2256_v53 }
  0x56   : > { %1009 = vmatmul.mubr.bf16.gmra.mxu0 %v2258_v54 }
  0x57   : > { %1170 = vmatmul.mubr.bf16.gmra.mxu1 %v2259_v55  ;;  %1016 = vmatprep.mubr.bf16.mxu0 %v2260_v56 }
  0x58   : > { %1177 = vmatprep.mubr.bf16.mxu1 %v2262_v57 }
  0x5e   : > { %1017 = vmatmul.mubr.bf16.gmra.mxu0 %v2264_v58 }
  0x5f   : > { %1178 = vmatmul.mubr.bf16.gmra.mxu1 %v2265_v59  ;;  %1024 = vmatprep.mubr.bf16.mxu0 %v2266_v60 }
  0x60   : > { %1185 = vmatprep.mubr.bf16.mxu1 %v2268_v61 }
  0x66   : > { %1025 = vmatmul.mubr.bf16.gmra.mxu0 %v2270_v62 }
  0x67   : > { %1186 = vmatmul.mubr.bf16.gmra.mxu1 %v2271_v63  ;;  %1032 = vmatprep.mubr.bf16.mxu0 %v2272_v0 }
  0x68   : > { %1193 = vmatprep.mubr.bf16.mxu1 %v2274_v1 }
  0x6e   : > { %1033 = vmatmul.mubr.bf16.gmra.mxu0 %v2276_v2 }
  0x6f   : > { %1194 = vmatmul.mubr.bf16.gmra.mxu1 %v2277_v3  ;;  %1040 = vmatprep.mubr.bf16.mxu0 %v2278_v4 }
  0x70   : > { %1201 = vmatprep.mubr.bf16.mxu1 %v2280_v5 }
  0x76   : > { %1041 = vmatmul.mubr.bf16.gmra.mxu0 %v2282_v6 }
  0x77   : > { %1202 = vmatmul.mubr.bf16.gmra.mxu1 %v2283_v7  ;;  %1048 = vmatprep.mubr.bf16.mxu0 %v2284_v8 }
  0x78   : > { %1209 = vmatprep.mubr.bf16.mxu1 %v2286_v9 }
  0x7e   : > { %1049 = vmatmul.mubr.bf16.gmra.mxu0 %v2288_v10 }
  0x7f   : > { %1210 = vmatmul.mubr.bf16.gmra.mxu1 %v2289_v11  ;;  %1056 = vmatprep.mubr.bf16.mxu0 %v2290_v12 }
  0x80   : > { %1217 = vmatprep.mubr.bf16.mxu1 %v2292_v13 }
  0x86   : > { %1057 = vmatmul.mubr.bf16.gmra.mxu0 %v2294_v14 }
  0x87   : > { %1218 = vmatmul.mubr.bf16.gmra.mxu1 %v2295_v15  ;;  %1064 = vmatprep.mubr.bf16.mxu0 %v2296_v16 }
  0x88   : > { %1225 = vmatprep.mubr.bf16.mxu1 %v2298_v17 }
  0x8e   : > { %1065 = vmatmul.mubr.bf16.gmra.mxu0 %v2300_v18 }
  0x8f   : > { %1226 = vmatmul.mubr.bf16.gmra.mxu1 %v2301_v19  ;;  %1072 = vmatprep.mubr.bf16.mxu0 %v2302_v20 }
  0x90   : > { %1233 = vmatprep.mubr.bf16.mxu1 %v2304_v21 }
  0x96   : > { %1073 = vmatmul.mubr.bf16.gmra.mxu0 %v2306_v22 }
  0x97   : > { %1234 = vmatmul.mubr.bf16.gmra.mxu1 %v2307_v23  ;;  %1080 = vmatprep.mubr.bf16.mxu0 %v2308_v24 }
  0x98   : > { %1241 = vmatprep.mubr.bf16.mxu1 %v2310_v25 }
  0x9e   : > { %1081 = vmatmul.mubr.bf16.gmra.mxu0 %v2312_v26 }
  0x9f   : > { %1242 = vmatmul.mubr.bf16.gmra.mxu1 %v2313_v27  ;;  %1088 = vmatprep.mubr.bf16.mxu0 %v2314_v28 }
  0xa0   : > { %1249 = vmatprep.mubr.bf16.mxu1 %v2316_v29 }
  0xa6   : > { %1089 = vmatmul.mubr.bf16.gmra.mxu0 %v2318_v30 }
  0xa7   : > { %1250 = vmatmul.mubr.bf16.gmra.mxu1 %v2319_v31 }
  0xee   : > { %v1960_v32 = vpop.f32.mrf.mxu0 }
  0xef   : > { %v2072_v33 = vpop.f32.mrf.mxu1 }
  0xf0   : > { %v1961_v34 = vpop.f32.mrf.mxu0 }
  0xf1   : > { %v1962_v35 = vadd.f32 %v1961_v34, %v1960_v32  ;;  %v2073_v36 = vpop.f32.mrf.mxu1 }
  0xf2   : > { %v2074_v37 = vadd.f32 %v2073_v36, %v2072_v33  ;;  %v1963_v38 = vpop.f32.mrf.mxu0 }
  0xf3   : > { %v2075_v39 = vpop.f32.mrf.mxu1 }
  0xf4   : > { %v1132_v40 = vadd.f32 %v2074_v37, %v1962_v35  ;;  %v1964_v41 = vpop.f32.mrf.mxu0 }
  0xf5   : > { %v1965_v43 = vadd.f32 %v1964_v41, %v1963_v38  ;;  %v2076_v44 = vpop.f32.mrf.mxu1 }
  0xf6   : > { %v2077_v45 = vadd.f32 %v2076_v44, %v2075_v39  ;;  %v1966_v46 = vpop.f32.mrf.mxu0  ;;  %v1364_v48 = vadd.f32 %v2556_v42, %v1132_v40 }
  0xf7   : > { %v2078_v47 = vpop.f32.mrf.mxu1 }
  0xf8   : > { %v1135_v49 = vadd.f32 %v2077_v45, %v1965_v43  ;;  %v1967_v50 = vpop.f32.mrf.mxu0  ;;  %v1396_v57 = vmax.f32 %v1364_v48, 0.0 }
  0xf9   : > { %v1968_v51 = vadd.f32 %v1967_v50, %v1966_v46  ;;  %v2079_v52 = vpop.f32.mrf.mxu1 }
  0xfa   : > { %v1365_v53 = vadd.f32 %v2556_v42, %v1135_v49  ;;  %v2080_v54 = vadd.f32 %v2079_v52, %v2078_v47  ;;  %v1969_v55 = vpop.f32.mrf.mxu0 }
  0xfb   : > { %v2081_v56 = vpop.f32.mrf.mxu1 }
  0xfc   : > { %v1397_v58 = vmax.f32 %v1365_v53, 0.0  ;;  %v1140_v59 = vadd.f32 %v2080_v54, %v1968_v51  ;;  %v1970_v60 = vpop.f32.mrf.mxu0 }
  0xfd   : > { %v1971_v61 = vadd.f32 %v1970_v60, %v1969_v55  ;;  %v2082_v62 = vpop.f32.mrf.mxu1 }
  0xfe   : > { %v1852_v63 = vpack.c.bf16 %v1397_v58, %v1396_v57  ;;  %v2083_v0 = vadd.f32 %v2082_v62, %v2081_v56  ;;  %v1972_v1 = vpop.f32.mrf.mxu0  ;;  %v1366_v3 = vadd.f32 %v2556_v42, %v1140_v59 }
  0xff   : > { %v2084_v2 = vpop.f32.mrf.mxu1 }
 0x100   : > { %1853 = vst [vmem:[%s2564_s20] sm:$0xff] %v1852_v63   ;;  %v1143_v4 = vadd.f32 %v2083_v0, %v1971_v61  ;;  %v1973_v5 = vpop.f32.mrf.mxu0  ;;  %v1398_v12 = vmax.f32 %v1366_v3, 0.0 }
 0x101   : > { %v1974_v6 = vadd.f32 %v1973_v5, %v1972_v1  ;;  %v2085_v7 = vpop.f32.mrf.mxu1 }
 0x102   : > { %v1367_v8 = vadd.f32 %v2556_v42, %v1143_v4  ;;  %v2086_v9 = vadd.f32 %v2085_v7, %v2084_v2  ;;  %v1975_v10 = vpop.f32.mrf.mxu0 }
 0x103   : > { %v2087_v11 = vpop.f32.mrf.mxu1 }
 0x104   : > { %v1399_v13 = vmax.f32 %v1367_v8, 0.0  ;;  %v1148_v14 = vadd.f32 %v2086_v9, %v1974_v6  ;;  %v1976_v15 = vpop.f32.mrf.mxu0 }
 0x105   : > { %v1977_v16 = vadd.f32 %v1976_v15, %v1975_v10  ;;  %v2088_v17 = vpop.f32.mrf.mxu1 }
 0x106   : > { %v1857_v18 = vpack.c.bf16 %v1399_v13, %v1398_v12  ;;  %v2089_v19 = vadd.f32 %v2088_v17, %v2087_v11  ;;  %v1978_v20 = vpop.f32.mrf.mxu0  ;;  %v1368_v22 = vadd.f32 %v2556_v42, %v1148_v14 }
 0x107   : > { %v2090_v21 = vpop.f32.mrf.mxu1 }
 0x108   : > { %1929 = vst [vmem:[%s2564_s20 + $0x8] sm:$0xff] %v1857_v18   ;;  %v1151_v23 = vadd.f32 %v2089_v19, %v1977_v16  ;;  %v1979_v24 = vpop.f32.mrf.mxu0  ;;  %v1400_v31 = vmax.f32 %v1368_v22, 0.0 }
 0x109   : > { %v1980_v25 = vadd.f32 %v1979_v24, %v1978_v20  ;;  %v2091_v26 = vpop.f32.mrf.mxu1 }
 0x10a   : > { %v1369_v27 = vadd.f32 %v2556_v42, %v1151_v23  ;;  %v2092_v28 = vadd.f32 %v2091_v26, %v2090_v21  ;;  %v1981_v29 = vpop.f32.mrf.mxu0 }
 0x10b   : > { %v2093_v30 = vpop.f32.mrf.mxu1 }
 0x10c   : > { %v1401_v32 = vmax.f32 %v1369_v27, 0.0  ;;  %v1156_v33 = vadd.f32 %v2092_v28, %v1980_v25  ;;  %v1982_v34 = vpop.f32.mrf.mxu0 }
 0x10d   : > { %v1983_v35 = vadd.f32 %v1982_v34, %v1981_v29  ;;  %v2094_v36 = vpop.f32.mrf.mxu1 }
 0x10e   : > { %v1862_v37 = vpack.c.bf16 %v1401_v32, %v1400_v31  ;;  %v2095_v38 = vadd.f32 %v2094_v36, %v2093_v30  ;;  %v1984_v39 = vpop.f32.mrf.mxu0  ;;  %v1370_v41 = vadd.f32 %v2556_v42, %v1156_v33 }
 0x10f   : > { %v2096_v40 = vpop.f32.mrf.mxu1 }
 0x110   : > { %1930 = vst [vmem:[%s2564_s20 + $0x10] sm:$0xff] %v1862_v37   ;;  %v1159_v43 = vadd.f32 %v2095_v38, %v1983_v35  ;;  %v1985_v44 = vpop.f32.mrf.mxu0  ;;  %v1402_v51 = vmax.f32 %v1370_v41, 0.0 }
 0x111   : > { %v1986_v45 = vadd.f32 %v1985_v44, %v1984_v39  ;;  %v2097_v46 = vpop.f32.mrf.mxu1 }
 0x112   : > { %v1371_v47 = vadd.f32 %v2556_v42, %v1159_v43  ;;  %v2098_v48 = vadd.f32 %v2097_v46, %v2096_v40  ;;  %v1987_v49 = vpop.f32.mrf.mxu0 }
 0x113   : > { %v2099_v50 = vpop.f32.mrf.mxu1 }
 0x114   : > { %v1403_v52 = vmax.f32 %v1371_v47, 0.0  ;;  %v1164_v53 = vadd.f32 %v2098_v48, %v1986_v45  ;;  %v1988_v54 = vpop.f32.mrf.mxu0 }
 0x115   : > { %v1989_v55 = vadd.f32 %v1988_v54, %v1987_v49  ;;  %v2100_v56 = vpop.f32.mrf.mxu1 }
 0x116   : > { %v1867_v57 = vpack.c.bf16 %v1403_v52, %v1402_v51  ;;  %v2101_v58 = vadd.f32 %v2100_v56, %v2099_v50  ;;  %v1990_v59 = vpop.f32.mrf.mxu0  ;;  %v1372_v61 = vadd.f32 %v2556_v42, %v1164_v53 }
 0x117   : > { %v2102_v60 = vpop.f32.mrf.mxu1 }
 0x118   : > { %1931 = vst [vmem:[%s2564_s20 + $0x18] sm:$0xff] %v1867_v57   ;;  %v1167_v62 = vadd.f32 %v2101_v58, %v1989_v55  ;;  %v1991_v63 = vpop.f32.mrf.mxu0  ;;  %v1404_v6 = vmax.f32 %v1372_v61, 0.0 }
 0x119   : > { %v1992_v0 = vadd.f32 %v1991_v63, %v1990_v59  ;;  %v2103_v1 = vpop.f32.mrf.mxu1 }
 0x11a   : > { %v1373_v2 = vadd.f32 %v2556_v42, %v1167_v62  ;;  %v2104_v3 = vadd.f32 %v2103_v1, %v2102_v60  ;;  %v1993_v4 = vpop.f32.mrf.mxu0 }
 0x11b   : > { %v2105_v5 = vpop.f32.mrf.mxu1 }
 0x11c   : > { %v1405_v7 = vmax.f32 %v1373_v2, 0.0  ;;  %v1172_v8 = vadd.f32 %v2104_v3, %v1992_v0  ;;  %v1994_v9 = vpop.f32.mrf.mxu0 }
 0x11d   : > { %v1995_v10 = vadd.f32 %v1994_v9, %v1993_v4  ;;  %v2106_v11 = vpop.f32.mrf.mxu1 }
 0x11e   : > { %v1872_v12 = vpack.c.bf16 %v1405_v7, %v1404_v6  ;;  %v2107_v13 = vadd.f32 %v2106_v11, %v2105_v5  ;;  %v1996_v14 = vpop.f32.mrf.mxu0  ;;  %v1374_v16 = vadd.f32 %v2556_v42, %v1172_v8 }
 0x11f   : > { %v2108_v15 = vpop.f32.mrf.mxu1 }
 0x120   : > { %1932 = vst [vmem:[%s2564_s20 + $0x20] sm:$0xff] %v1872_v12   ;;  %v1175_v17 = vadd.f32 %v2107_v13, %v1995_v10  ;;  %v1997_v18 = vpop.f32.mrf.mxu0  ;;  %v1406_v25 = vmax.f32 %v1374_v16, 0.0 }
 0x121   : > { %v1998_v19 = vadd.f32 %v1997_v18, %v1996_v14  ;;  %v2109_v20 = vpop.f32.mrf.mxu1 }
 0x122   : > { %v1375_v21 = vadd.f32 %v2556_v42, %v1175_v17  ;;  %v2110_v22 = vadd.f32 %v2109_v20, %v2108_v15  ;;  %v1999_v23 = vpop.f32.mrf.mxu0 }
 0x123   : > { %v2111_v24 = vpop.f32.mrf.mxu1 }
 0x124   : > { %v1407_v26 = vmax.f32 %v1375_v21, 0.0  ;;  %v1180_v27 = vadd.f32 %v2110_v22, %v1998_v19  ;;  %v2000_v28 = vpop.f32.mrf.mxu0 }
 0x125   : > { %v2001_v29 = vadd.f32 %v2000_v28, %v1999_v23  ;;  %v2112_v30 = vpop.f32.mrf.mxu1 }
 0x126   : > { %v1877_v31 = vpack.c.bf16 %v1407_v26, %v1406_v25  ;;  %v2113_v32 = vadd.f32 %v2112_v30, %v2111_v24  ;;  %v2002_v33 = vpop.f32.mrf.mxu0  ;;  %v1376_v35 = vadd.f32 %v2556_v42, %v1180_v27 }
 0x127   : > { %v2114_v34 = vpop.f32.mrf.mxu1 }
 0x128   : > { %1933 = vst [vmem:[%s2564_s20 + $0x28] sm:$0xff] %v1877_v31   ;;  %v1183_v36 = vadd.f32 %v2113_v32, %v2001_v29  ;;  %v2003_v37 = vpop.f32.mrf.mxu0  ;;  %v1408_v45 = vmax.f32 %v1376_v35, 0.0 }
 0x129   : > { %v2004_v38 = vadd.f32 %v2003_v37, %v2002_v33  ;;  %v2115_v39 = vpop.f32.mrf.mxu1 }
 0x12a   : > { %v1377_v40 = vadd.f32 %v2556_v42, %v1183_v36  ;;  %v2116_v41 = vadd.f32 %v2115_v39, %v2114_v34  ;;  %v2005_v43 = vpop.f32.mrf.mxu0 }
 0x12b   : > { %v2117_v44 = vpop.f32.mrf.mxu1 }
 0x12c   : > { %v1409_v46 = vmax.f32 %v1377_v40, 0.0  ;;  %v1188_v47 = vadd.f32 %v2116_v41, %v2004_v38  ;;  %v2006_v48 = vpop.f32.mrf.mxu0 }
 0x12d   : > { %v2007_v49 = vadd.f32 %v2006_v48, %v2005_v43  ;;  %v2118_v50 = vpop.f32.mrf.mxu1 }
 0x12e   : > { %v1882_v51 = vpack.c.bf16 %v1409_v46, %v1408_v45  ;;  %v2119_v52 = vadd.f32 %v2118_v50, %v2117_v44  ;;  %v2008_v53 = vpop.f32.mrf.mxu0  ;;  %v1378_v55 = vadd.f32 %v2556_v42, %v1188_v47 }
 0x12f   : > { %v2120_v54 = vpop.f32.mrf.mxu1 }
 0x130   : > { %1934 = vst [vmem:[%s2564_s20 + $0x30] sm:$0xff] %v1882_v51   ;;  %v1191_v56 = vadd.f32 %v2119_v52, %v2007_v49  ;;  %v2009_v57 = vpop.f32.mrf.mxu0  ;;  %v1410_v0 = vmax.f32 %v1378_v55, 0.0 }
 0x131   : > { %v2010_v58 = vadd.f32 %v2009_v57, %v2008_v53  ;;  %v2121_v59 = vpop.f32.mrf.mxu1 }
 0x132   : > { %v1379_v60 = vadd.f32 %v2556_v42, %v1191_v56  ;;  %v2122_v61 = vadd.f32 %v2121_v59, %v2120_v54  ;;  %v2011_v62 = vpop.f32.mrf.mxu0 }
 0x133   : > { %v2123_v63 = vpop.f32.mrf.mxu1 }
 0x134   : > { %v1411_v1 = vmax.f32 %v1379_v60, 0.0  ;;  %v1196_v2 = vadd.f32 %v2122_v61, %v2010_v58  ;;  %v2012_v3 = vpop.f32.mrf.mxu0 }
 0x135   : > { %v2013_v4 = vadd.f32 %v2012_v3, %v2011_v62  ;;  %v2124_v5 = vpop.f32.mrf.mxu1 }
 0x136   : > { %v1887_v6 = vpack.c.bf16 %v1411_v1, %v1410_v0  ;;  %v2125_v7 = vadd.f32 %v2124_v5, %v2123_v63  ;;  %v2014_v8 = vpop.f32.mrf.mxu0  ;;  %v1380_v10 = vadd.f32 %v2556_v42, %v1196_v2 }
 0x137   : > { %v2126_v9 = vpop.f32.mrf.mxu1 }
 0x138   : > { %1935 = vst [vmem:[%s2564_s20 + $0x38] sm:$0xff] %v1887_v6   ;;  %v1199_v11 = vadd.f32 %v2125_v7, %v2013_v4  ;;  %v2015_v12 = vpop.f32.mrf.mxu0  ;;  %v1412_v19 = vmax.f32 %v1380_v10, 0.0 }
 0x139   : > { %v2016_v13 = vadd.f32 %v2015_v12, %v2014_v8  ;;  %v2127_v14 = vpop.f32.mrf.mxu1 }
 0x13a   : > { %v1381_v15 = vadd.f32 %v2556_v42, %v1199_v11  ;;  %v2128_v16 = vadd.f32 %v2127_v14, %v2126_v9  ;;  %v2017_v17 = vpop.f32.mrf.mxu0 }
 0x13b   : > { %v2129_v18 = vpop.f32.mrf.mxu1 }
 0x13c   : > { %v1413_v20 = vmax.f32 %v1381_v15, 0.0  ;;  %v1204_v21 = vadd.f32 %v2128_v16, %v2016_v13  ;;  %v2018_v22 = vpop.f32.mrf.mxu0 }
 0x13d   : > { %v2019_v23 = vadd.f32 %v2018_v22, %v2017_v17  ;;  %v2130_v24 = vpop.f32.mrf.mxu1 }
 0x13e   : > { %v1892_v25 = vpack.c.bf16 %v1413_v20, %v1412_v19  ;;  %v2131_v26 = vadd.f32 %v2130_v24, %v2129_v18  ;;  %v2020_v27 = vpop.f32.mrf.mxu0  ;;  %v1382_v29 = vadd.f32 %v2556_v42, %v1204_v21 }
 0x13f   : > { %v2132_v28 = vpop.f32.mrf.mxu1 }
 0x140   : > { %1936 = vst [vmem:[%s2564_s20 + $0x40] sm:$0xff] %v1892_v25   ;;  %v1207_v30 = vadd.f32 %v2131_v26, %v2019_v23  ;;  %v2021_v31 = vpop.f32.mrf.mxu0  ;;  %v1414_v38 = vmax.f32 %v1382_v29, 0.0 }
 0x141   : > { %v2022_v32 = vadd.f32 %v2021_v31, %v2020_v27  ;;  %v2133_v33 = vpop.f32.mrf.mxu1 }
 0x142   : > { %v1383_v34 = vadd.f32 %v2556_v42, %v1207_v30  ;;  %v2134_v35 = vadd.f32 %v2133_v33, %v2132_v28  ;;  %v2023_v36 = vpop.f32.mrf.mxu0 }
 0x143   : > { %v2135_v37 = vpop.f32.mrf.mxu1 }
 0x144   : > { %v1415_v39 = vmax.f32 %v1383_v34, 0.0  ;;  %v1212_v40 = vadd.f32 %v2134_v35, %v2022_v32  ;;  %v2024_v41 = vpop.f32.mrf.mxu0 }
 0x145   : > { %v2025_v43 = vadd.f32 %v2024_v41, %v2023_v36  ;;  %v2136_v44 = vpop.f32.mrf.mxu1 }
 0x146   : > { %v1897_v45 = vpack.c.bf16 %v1415_v39, %v1414_v38  ;;  %v2137_v46 = vadd.f32 %v2136_v44, %v2135_v37  ;;  %v2026_v47 = vpop.f32.mrf.mxu0  ;;  %v1384_v49 = vadd.f32 %v2556_v42, %v1212_v40 }
 0x147   : > { %v2138_v48 = vpop.f32.mrf.mxu1 }
 0x148   : > { %1937 = vst [vmem:[%s2564_s20 + $0x48] sm:$0xff] %v1897_v45   ;;  %v1215_v50 = vadd.f32 %v2137_v46, %v2025_v43  ;;  %v2027_v51 = vpop.f32.mrf.mxu0  ;;  %v1416_v58 = vmax.f32 %v1384_v49, 0.0 }
 0x149   : > { %v2028_v52 = vadd.f32 %v2027_v51, %v2026_v47  ;;  %v2139_v53 = vpop.f32.mrf.mxu1 }
 0x14a   : > { %v1385_v54 = vadd.f32 %v2556_v42, %v1215_v50  ;;  %v2140_v55 = vadd.f32 %v2139_v53, %v2138_v48  ;;  %v2029_v56 = vpop.f32.mrf.mxu0 }
 0x14b   : > { %v2141_v57 = vpop.f32.mrf.mxu1 }
 0x14c   : > { %v1417_v59 = vmax.f32 %v1385_v54, 0.0  ;;  %v1220_v60 = vadd.f32 %v2140_v55, %v2028_v52  ;;  %v2030_v61 = vpop.f32.mrf.mxu0 }
 0x14d   : > { %v2031_v62 = vadd.f32 %v2030_v61, %v2029_v56  ;;  %v2142_v63 = vpop.f32.mrf.mxu1 }
 0x14e   : > { %v1902_v0 = vpack.c.bf16 %v1417_v59, %v1416_v58  ;;  %v2143_v1 = vadd.f32 %v2142_v63, %v2141_v57  ;;  %v2032_v2 = vpop.f32.mrf.mxu0  ;;  %v1386_v4 = vadd.f32 %v2556_v42, %v1220_v60 }
 0x14f   : > { %v2144_v3 = vpop.f32.mrf.mxu1 }
 0x150   : > { %1938 = vst [vmem:[%s2564_s20 + $0x50] sm:$0xff] %v1902_v0   ;;  %v1223_v5 = vadd.f32 %v2143_v1, %v2031_v62  ;;  %v2033_v6 = vpop.f32.mrf.mxu0  ;;  %v1418_v13 = vmax.f32 %v1386_v4, 0.0 }
 0x151   : > { %v2034_v7 = vadd.f32 %v2033_v6, %v2032_v2  ;;  %v2145_v8 = vpop.f32.mrf.mxu1 }
 0x152   : > { %v1387_v9 = vadd.f32 %v2556_v42, %v1223_v5  ;;  %v2146_v10 = vadd.f32 %v2145_v8, %v2144_v3  ;;  %v2035_v11 = vpop.f32.mrf.mxu0 }
 0x153   : > { %v2147_v12 = vpop.f32.mrf.mxu1 }
 0x154   : > { %v1419_v14 = vmax.f32 %v1387_v9, 0.0  ;;  %v1228_v15 = vadd.f32 %v2146_v10, %v2034_v7  ;;  %v2036_v16 = vpop.f32.mrf.mxu0 }
 0x155   : > { %v2037_v17 = vadd.f32 %v2036_v16, %v2035_v11  ;;  %v2148_v18 = vpop.f32.mrf.mxu1 }
 0x156   : > { %v1907_v19 = vpack.c.bf16 %v1419_v14, %v1418_v13  ;;  %v2149_v20 = vadd.f32 %v2148_v18, %v2147_v12  ;;  %v2038_v21 = vpop.f32.mrf.mxu0  ;;  %v1388_v23 = vadd.f32 %v2556_v42, %v1228_v15 }
 0x157   : > { %v2150_v22 = vpop.f32.mrf.mxu1 }
 0x158   : > { %1939 = vst [vmem:[%s2564_s20 + $0x58] sm:$0xff] %v1907_v19   ;;  %v1231_v24 = vadd.f32 %v2149_v20, %v2037_v17  ;;  %v2039_v25 = vpop.f32.mrf.mxu0  ;;  %v1420_v32 = vmax.f32 %v1388_v23, 0.0 }
 0x159   : > { %v2040_v26 = vadd.f32 %v2039_v25, %v2038_v21  ;;  %v2151_v27 = vpop.f32.mrf.mxu1 }
 0x15a   : > { %v1389_v28 = vadd.f32 %v2556_v42, %v1231_v24  ;;  %v2152_v29 = vadd.f32 %v2151_v27, %v2150_v22  ;;  %v2041_v30 = vpop.f32.mrf.mxu0 }
 0x15b   : > { %v2153_v31 = vpop.f32.mrf.mxu1 }
 0x15c   : > { %v1421_v33 = vmax.f32 %v1389_v28, 0.0  ;;  %v1236_v34 = vadd.f32 %v2152_v29, %v2040_v26  ;;  %v2042_v35 = vpop.f32.mrf.mxu0 }
 0x15d   : > { %v2043_v36 = vadd.f32 %v2042_v35, %v2041_v30  ;;  %v2154_v37 = vpop.f32.mrf.mxu1 }
 0x15e   : > { %v1912_v38 = vpack.c.bf16 %v1421_v33, %v1420_v32  ;;  %v2155_v39 = vadd.f32 %v2154_v37, %v2153_v31  ;;  %v2044_v40 = vpop.f32.mrf.mxu0  ;;  %v1390_v43 = vadd.f32 %v2556_v42, %v1236_v34 }
 0x15f   : > { %v2156_v41 = vpop.f32.mrf.mxu1 }
 0x160   : > { %1940 = vst [vmem:[%s2564_s20 + $0x60] sm:$0xff] %v1912_v38   ;;  %v1239_v44 = vadd.f32 %v2155_v39, %v2043_v36  ;;  %v2045_v45 = vpop.f32.mrf.mxu0  ;;  %v1422_v52 = vmax.f32 %v1390_v43, 0.0 }
 0x161   : > { %v2046_v46 = vadd.f32 %v2045_v45, %v2044_v40  ;;  %v2157_v47 = vpop.f32.mrf.mxu1 }
 0x162   : > { %v1391_v48 = vadd.f32 %v2556_v42, %v1239_v44  ;;  %v2158_v49 = vadd.f32 %v2157_v47, %v2156_v41  ;;  %v2047_v50 = vpop.f32.mrf.mxu0 }
 0x163   : > { %v2159_v51 = vpop.f32.mrf.mxu1 }
 0x164   : > { %v1423_v53 = vmax.f32 %v1391_v48, 0.0  ;;  %v1244_v54 = vadd.f32 %v2158_v49, %v2046_v46  ;;  %v2048_v55 = vpop.f32.mrf.mxu0 }
 0x165   : > { %v2049_v56 = vadd.f32 %v2048_v55, %v2047_v50  ;;  %v2160_v57 = vpop.f32.mrf.mxu1 }
 0x166   : > { %v1917_v58 = vpack.c.bf16 %v1423_v53, %v1422_v52  ;;  %v2161_v59 = vadd.f32 %v2160_v57, %v2159_v51  ;;  %v2050_v60 = vpop.f32.mrf.mxu0  ;;  %v1392_v62 = vadd.f32 %v2556_v42, %v1244_v54 }
 0x167   : > { %v2162_v61 = vpop.f32.mrf.mxu1 }
 0x168   : > { %1941 = vst [vmem:[%s2564_s20 + $0x68] sm:$0xff] %v1917_v58   ;;  %v1247_v63 = vadd.f32 %v2161_v59, %v2049_v56  ;;  %v2051_v0 = vpop.f32.mrf.mxu0  ;;  %v1424_v7 = vmax.f32 %v1392_v62, 0.0 }
 0x169   : > { %v2052_v1 = vadd.f32 %v2051_v0, %v2050_v60  ;;  %v2163_v2 = vpop.f32.mrf.mxu1 }
 0x16a   : > { %v1393_v3 = vadd.f32 %v2556_v42, %v1247_v63  ;;  %v2164_v4 = vadd.f32 %v2163_v2, %v2162_v61  ;;  %v2053_v5 = vpop.f32.mrf.mxu0 }
 0x16b   : > { %v2165_v6 = vpop.f32.mrf.mxu1 }
 0x16c   : > { %v1425_v8 = vmax.f32 %v1393_v3, 0.0  ;;  %v1252_v9 = vadd.f32 %v2164_v4, %v2052_v1  ;;  %v2054_v10 = vpop.f32.mrf.mxu0 }
 0x16d   : > { %v2055_v11 = vadd.f32 %v2054_v10, %v2053_v5  ;;  %v2166_v12 = vpop.f32.mrf.mxu1 }
 0x16e   : > { %v1922_v13 = vpack.c.bf16 %v1425_v8, %v1424_v7  ;;  %v2167_v14 = vadd.f32 %v2166_v12, %v2165_v6  ;;  %v1394_v15 = vadd.f32 %v2556_v42, %v1252_v9 }
 0x170   : > { %1942 = vst [vmem:[%s2564_s20 + $0x70] sm:$0xff] %v1922_v13   ;;  %v1255_v16 = vadd.f32 %v2167_v14, %v2055_v11  ;;  %v1426_v18 = vmax.f32 %v1394_v15, 0.0 }
 0x172   : > { %v1395_v17 = vadd.f32 %v2556_v42, %v1255_v16 }
 0x174   : > { %v1427_v19 = vmax.f32 %v1395_v17, 0.0 }
 0x176   : > { %v1927_v20 = vpack.c.bf16 %v1427_v19, %v1426_v18 }
 0x178   : > { %1943 = vst [vmem:[%s2564_s20 + $0x78] sm:$0xff] %v1927_v20  }
 0x179 PF: > { %s13_s14 = sadd.s32 1, %s2342_s14   ;;  %s2625_s12 = smov %s2338_s13 }
 0x17a   : > { %p10_p5 = scmp.ge.s32.totalorder %s13_s14, 4   ;;  %s2626_s13 = smov %s2628_s15 }
 0x17c   :  { %12 = sbr.rel (!%p10_p5) target bundleno = 2 (0x2), region = 73 }

</bundles_post_ra>
